<compile_context>
chip_gen: v7x
topology: tpu7x:2x2x1
jax: 0.10.0
libtpu: 0.0.40
codegen_flags: <defaults>
</compile_context>

<pallas_src>
import functools
import math

import numpy as np
import jax
import jax.numpy as jnp
from jax.experimental import pallas as pl
from jax.experimental.pallas import tpu as pltpu

NEG_INF = -1e30  # finite "-inf": fully masked rows give uniform attn, not NaN


# ----------------------------------------------------------------------------
# Pallas kernel: all encoder layers fused, gridded over (batch-block, layer)
# ----------------------------------------------------------------------------
def fused_encoder_kernel(x_ref, mask_ref,
                         wqkv_ref, bqkv_ref, wo_ref, bo_ref,
                         ln1g_ref, ln1b_ref,
                         w1_ref, b1_ref, w2_ref, b2_ref,
                         ln2g_ref, ln2b_ref,
                         o_ref, act_ref, *, num_heads):
    l = pl.program_id(1)

    # Layer 0: load the embedded/pos-encoded input into the VMEM carry.
    @pl.when(l == 0)
    def _():
        act_ref[...] = x_ref[...]

    x = act_ref[...]                       # (TB, S, D) f32 running activation
    TB, S, D = x.shape
    H = num_heads
    hd = D // H

    x2d = x.reshape(TB * S, D)             # f32, reused for the residual

    # --- fused lane-dense QKV projection: bf16 MXU operands, f32 accumulate.
    # 1/sqrt(hd) is pre-folded into the WQ / BQ slice on the host.
    qkv = jnp.dot(x2d.astype(jnp.bfloat16), wqkv_ref[0],
                  preferred_element_type=jnp.float32) + bqkv_ref[0]  # (TB*S,3D)
    q = qkv[:, 0 * D:1 * D]
    k = qkv[:, 1 * D:2 * D]
    v = qkv[:, 2 * D:3 * D]

    def split_heads(t):
        # (TB*S, D) -> (H*TB, S, hd): static lane slices + leading-dim reshape
        parts = [t[:, h * hd:(h + 1) * hd].reshape(TB, S, hd) for h in range(H)]
        return jnp.concatenate(parts, axis=0).astype(jnp.bfloat16)

    qh = split_heads(q)                    # (H*TB, S, hd) bf16
    kh = split_heads(k)
    vh = split_heads(v)

    # --- attention scores + softmax: bf16 MXU operands, f32 softmax ---------
    s = jnp.einsum('bqf,bkf->bqk', qh, kh,
                   preferred_element_type=jnp.float32)       # (H*TB, S, S) f32
    mask = mask_ref[...]                                     # (TB, 1, S)
    s = s + jnp.concatenate([mask] * H, axis=0)              # (H*TB, 1, S)
    s = s - jnp.max(s, axis=-1, keepdims=True)
    p = jnp.exp(s)
    p = p * pl.reciprocal(jnp.sum(p, axis=-1, keepdims=True), approx=True)

    ctx = jnp.einsum('bqk,bkf->bqf', p.astype(jnp.bfloat16), vh,
                     preferred_element_type=jnp.float32)     # (H*TB, S, hd)

    # concat heads back to lanes -> (TB*S, D), single lane-dense WO matmul
    ctx2d = jnp.concatenate(
        [ctx[h * TB:(h + 1) * TB].reshape(TB * S, hd) for h in range(H)],
        axis=-1)
    attn = jnp.dot(ctx2d.astype(jnp.bfloat16), wo_ref[0],
                   preferred_element_type=jnp.float32) + bo_ref[0]   # (TB*S, D)

    # --- residual + LayerNorm (single-pass statistics) ----------------------
    def layer_norm(h, g, b):
        mu = jnp.mean(h, axis=-1, keepdims=True)
        e2 = jnp.mean(h * h, axis=-1, keepdims=True)
        inv = jax.lax.rsqrt(e2 - mu * mu + 1e-5)
        return (h - mu) * inv * g + b

    h1 = layer_norm(x2d + attn, ln1g_ref[0], ln1b_ref[0])

    # --- feed-forward network (ReLU): bf16 MXU operands, f32 accumulate -----
    f = jnp.dot(h1.astype(jnp.bfloat16), w1_ref[0],
                preferred_element_type=jnp.float32) + b1_ref[0]
    f = jnp.maximum(f, 0.0)
    f = jnp.dot(f.astype(jnp.bfloat16), w2_ref[0],
                preferred_element_type=jnp.float32) + b2_ref[0]

    out2d = layer_norm(h1 + f, ln2g_ref[0], ln2b_ref[0])
    out = out2d.reshape(TB, S, D)

    act_ref[...] = out                     # carry to next layer (same b block)

    # Output block stays VMEM-resident across the layer axis; only store once.
    @pl.when(l == pl.num_programs(1) - 1)
    def _():
        o_ref[...] = out


PACKED_ORDER = ['wqkv', 'bqkv', 'wo', 'bo', 'ln1g', 'ln1b',
                'w1', 'b1', 'w2', 'b2', 'ln2g', 'ln2b']


def fused_encoder_pallas(x, mask_add, packed, num_heads, *, batch_block=None):
    """x: (B,S,D) f32, mask_add: (B,1,S) f32, packed: dict of (L, r, c) arrays."""
    B, S, D = x.shape
    L = packed['wqkv'].shape[0]
    TB = B if batch_block is None else batch_block
    assert B % TB == 0

    def w_spec(arr):
        blk = (1,) + arr.shape[1:]
        return pl.BlockSpec(blk, lambda b, l: (l, 0, 0))

    w_specs = [w_spec(packed[n]) for n in PACKED_ORDER]
    w_vals = [packed[n] for n in PACKED_ORDER]

    kernel = functools.partial(fused_encoder_kernel, num_heads=num_heads)

    return pl.pallas_call(
        kernel,
        out_shape=jax.ShapeDtypeStruct((B, S, D), jnp.float32),
        grid=(B // TB, L),
        in_specs=[pl.BlockSpec((TB, S, D), lambda b, l: (b, 0, 0)),
                  pl.BlockSpec((TB, 1, S), lambda b, l: (b, 0, 0))] + w_specs,
        out_specs=pl.BlockSpec((TB, S, D), lambda b, l: (b, 0, 0)),
        scratch_shapes=[pltpu.VMEM((TB, S, D), jnp.float32)],
        compiler_params=pltpu.CompilerParams(
            dimension_semantics=("parallel", "arbitrary"),
            vmem_limit_bytes=32 * 1024 * 1024),   # explicit budget (v7x-safe)
    )(x, mask_add, *w_vals)


# ----------------------------------------------------------------------------
# Host-side parameter packing: stack layers, fuse WQ|WK|WV into (D,3D),
# fold 1/sqrt(hd) into the Q slice, cast matmul weights to bf16.
# ----------------------------------------------------------------------------
def pack_layer_params(layer_params, num_heads):
    D = layer_params[0]['wq'].shape[0]
    hd = D // num_heads
    scale = 1.0 / math.sqrt(hd)

    def stack(fn, dtype=None):
        a = jnp.stack([fn(p) for p in layer_params], axis=0)
        return a.astype(dtype) if dtype is not None else a

    return {
        'wqkv': stack(lambda p: jnp.concatenate(
            [p['wq'] * scale, p['wk'], p['wv']], axis=1), jnp.bfloat16),  # (L,D,3D)
        'bqkv': stack(lambda p: jnp.concatenate(
            [p['bq'] * scale, p['bk'], p['bv']], axis=1)),                # (L,1,3D)
        'wo': stack(lambda p: p['wo'], jnp.bfloat16),                     # (L,D,D)
        'bo': stack(lambda p: p['bo']),                                   # (L,1,D)
        'ln1g': stack(lambda p: p['ln1g']),
        'ln1b': stack(lambda p: p['ln1b']),
        'w1': stack(lambda p: p['w1'], jnp.bfloat16),                     # (L,D,F)
        'b1': stack(lambda p: p['b1']),
        'w2': stack(lambda p: p['w2'], jnp.bfloat16),                     # (L,F,D)
        'b2': stack(lambda p: p['b2']),
        'ln2g': stack(lambda p: p['ln2g']),
        'ln2b': stack(lambda p: p['ln2b']),
    }


# ----------------------------------------------------------------------------
# Plain-JAX glue: embeddings, positional encoding, mask construction
# ----------------------------------------------------------------------------
def make_mask_jax(hugging_face_mask):
    # PyTorch make_mask: 0 where mask!=0, -inf where mask==0 (finite here).
    return jnp.where(hugging_face_mask == 0, NEG_INF, 0.0).astype(jnp.float32)


def sinusoidal_pe(max_len, d_model):
    position = np.arange(max_len)[:, None].astype(np.float32)
    div_term = np.exp(np.arange(0, d_model, 2).astype(np.float32)
                      * (-math.log(10000.0) / d_model))
    pe = np.zeros((max_len, d_model), dtype=np.float32)
    pe[:, 0::2] = np.sin(position * div_term)
    pe[:, 1::2] = np.cos(position * div_term)
    return jnp.asarray(pe)


def bidirectional_transformer_forward(tokens, hf_mask, emb_table, pe, packed,
                                      num_heads):
    B, S = tokens.shape
    D = emb_table.shape[1]
    hidden = jnp.take(emb_table, tokens, axis=0) * math.sqrt(D)   # (B,S,D)
    hidden = hidden + pe[:S][None, :, :]                          # pos encoding
    mask_add = make_mask_jax(hf_mask).reshape(B, 1, S)
    return fused_encoder_pallas(hidden.astype(jnp.float32), mask_add, packed,
                                num_heads)


# ----------------------------------------------------------------------------
# Pure-JAX f32 reference (canonical formulation, ORIGINAL unpacked params)
# ----------------------------------------------------------------------------
def encoder_layer_ref(x, mask_add, p, num_heads):
    B, S, D = x.shape
    hd = D // num_heads
    q = jnp.einsum('bsd,de->bse', x, p['wq']) + p['bq'][0]
    k = jnp.einsum('bsd,de->bse', x, p['wk']) + p['bk'][0]
    v = jnp.einsum('bsd,de->bse', x, p['wv']) + p['bv'][0]
    qh = q.reshape(B, S, num_heads, hd).transpose(0, 2, 1, 3)
    kh = k.reshape(B, S, num_heads, hd).transpose(0, 2, 1, 3)
    vh = v.reshape(B, S, num_heads, hd).transpose(0, 2, 1, 3)
    scores = jnp.einsum('bhqd,bhkd->bhqk', qh, kh) / math.sqrt(hd)
    scores = scores + mask_add[:, None, None, :]
    p_att = jax.nn.softmax(scores, axis=-1)
    ctx = jnp.einsum('bhqk,bhkd->bhqd', p_att, vh)
    ctx = ctx.transpose(0, 2, 1, 3).reshape(B, S, D)
    attn_out = jnp.einsum('bsd,de->bse', ctx, p['wo']) + p['bo'][0]

    def ln(h, g, b):
        mu = jnp.mean(h, axis=-1, keepdims=True)
        var = jnp.mean((h - mu) ** 2, axis=-1, keepdims=True)
        return (h - mu) * jax.lax.rsqrt(var + 1e-5) * g[0] + b[0]

    h1 = ln(x + attn_out, p['ln1g'], p['ln1b'])
    f = jnp.maximum(jnp.einsum('bsd,df->bsf', h1, p['w1']) + p['b1'][0], 0.0)
    f = jnp.einsum('bsf,fd->bsd', f, p['w2']) + p['b2'][0]
    return ln(h1 + f, p['ln2g'], p['ln2b'])


def forward_ref(tokens, hf_mask, emb_table, pe, layer_params, num_heads):
    B, S = tokens.shape
    D = emb_table.shape[1]
    hidden = jnp.take(emb_table, tokens, axis=0) * math.sqrt(D)
    hidden = hidden + pe[:S][None, :, :]
    mask_add = make_mask_jax(hf_mask)                   # (B,S)
    for p in layer_params:
        hidden = encoder_layer_ref(hidden, mask_add, p, num_heads)
    return hidden


# ----------------------------------------------------------------------------
# Deterministic parameter initialization
# ----------------------------------------------------------------------------
def init_layer_params(key, d_model, d_ffn):
    ks = jax.random.split(key, 14)
    std = 0.02
    return {
        'wq': jax.random.normal(ks[0], (d_model, d_model), jnp.float32) * std,
        'bq': jax.random.normal(ks[1], (1, d_model), jnp.float32) * std,
        'wk': jax.random.normal(ks[2], (d_model, d_model), jnp.float32) * std,
        'bk': jax.random.normal(ks[3], (1, d_model), jnp.float32) * std,
        'wv': jax.random.normal(ks[4], (d_model, d_model), jnp.float32) * std,
        'bv': jax.random.normal(ks[5], (1, d_model), jnp.float32) * std,
        'wo': jax.random.normal(ks[6], (d_model, d_model), jnp.float32) * std,
        'bo': jax.random.normal(ks[7], (1, d_model), jnp.float32) * std,
        'ln1g': 1.0 + jax.random.normal(ks[8], (1, d_model), jnp.float32) * 0.1,
        'ln1b': jax.random.normal(ks[9], (1, d_model), jnp.float32) * 0.1,
        'w1': jax.random.normal(ks[10], (d_model, d_ffn), jnp.float32) * std,
        'b1': jax.random.normal(ks[11], (1, d_ffn), jnp.float32) * std,
        'w2': jax.random.normal(ks[12], (d_ffn, d_model), jnp.float32) * std,
        'b2': jax.random.normal(ks[13], (1, d_model), jnp.float32) * std,
        'ln2g': jnp.ones((1, d_model), jnp.float32),
        'ln2b': jnp.zeros((1, d_model), jnp.float32),
    }


if __name__ == "__main__":
    # Small, module-consistent shapes.
    # NOTE: real-model dims should be multiples of 128 (lane-dense); this toy
    # config only validates correctness, not MXU throughput.
    vocab_size = 50
    max_len = 16
    num_layers = 2
    d_model = 32
    num_heads = 4
    d_ffn = 64
    B, S = 2, 8

    key = jax.random.PRNGKey(0)
    k_emb, k_tok, *k_layers = jax.random.split(key, 2 + num_layers)

    emb_table = jax.random.normal(k_emb, (vocab_size, d_model), jnp.float32) * 0.02
    pe = sinusoidal_pe(max_len, d_model)
    layer_params = [init_layer_params(k_layers[i], d_model, d_ffn)
                    for i in range(num_layers)]
    packed = pack_layer_params(layer_params, num_heads)

    tokens = jax.random.randint(k_tok, (B, S), 0, vocab_size, dtype=jnp.int32)
    # hugging-face style attention mask: 1 = keep, 0 = pad (last 2 of row 1)
    hf_mask = jnp.array([[1, 1, 1, 1, 1, 1, 1, 1],
                         [1, 1, 1, 1, 1, 1, 0, 0]], dtype=jnp.int32)

    out = bidirectional_transformer_forward(tokens, hf_mask, emb_table, pe,
                                            packed, num_heads)
    out = jax.block_until_ready(out)

    ref = forward_ref(tokens, hf_mask, emb_table, pe, layer_params, num_heads)
    ref = jax.block_until_ready(ref)

    assert out.shape == (B, S, d_model)
    assert not bool(jnp.any(jnp.isnan(out)))
    # Kernel uses bf16 MXU operands everywhere + approx reciprocal; ref is f32.
    np.testing.assert_allclose(np.asarray(out), np.asarray(ref),
                               rtol=2e-2, atol=2e-2)

    print("KERNEL_OK")
</pallas_src>

<mosaic_0001>
module attributes {stable_mosaic.version = 11 : i64} {
  func.func @fused_encoder_kernel(%arg0: i32, %arg1: i32, %arg2: memref<2x8x32xf32, #tpu.memory_space<vmem>>, %arg3: memref<2x1x8xf32, #tpu.memory_space<vmem>>, %arg4: memref<1x32x96xbf16, #tpu.memory_space<vmem>>, %arg5: memref<1x1x96xf32, #tpu.memory_space<vmem>>, %arg6: memref<1x32x32xbf16, #tpu.memory_space<vmem>>, %arg7: memref<1x1x32xf32, #tpu.memory_space<vmem>>, %arg8: memref<1x1x32xf32, #tpu.memory_space<vmem>>, %arg9: memref<1x1x32xf32, #tpu.memory_space<vmem>>, %arg10: memref<1x32x64xbf16, #tpu.memory_space<vmem>>, %arg11: memref<1x1x64xf32, #tpu.memory_space<vmem>>, %arg12: memref<1x64x32xbf16, #tpu.memory_space<vmem>>, %arg13: memref<1x1x32xf32, #tpu.memory_space<vmem>>, %arg14: memref<1x1x32xf32, #tpu.memory_space<vmem>>, %arg15: memref<1x1x32xf32, #tpu.memory_space<vmem>>, %arg16: memref<2x8x32xf32, #tpu.memory_space<vmem>>, %arg17: memref<2x8x32xf32, #tpu.memory_space<vmem>>) attributes {dimension_semantics = [#tpu.dimension_semantics<parallel>, #tpu.dimension_semantics<arbitrary>], iteration_bounds = array<i64: 1, 2>, scalar_prefetch = 0 : i64, scratch_operands = 1 : i64, tpu.core_type = #tpu.core_type<tc>, window_params = [{transform_indices = @transform_0, window_bounds = array<i64: 2, 8, 32>}, {transform_indices = @transform_1, window_bounds = array<i64: 2, 1, 8>}, {transform_indices = @transform_2, window_bounds = array<i64: 1, 32, 96>}, {transform_indices = @transform_3, window_bounds = array<i64: 1, 1, 96>}, {transform_indices = @transform_4, window_bounds = array<i64: 1, 32, 32>}, {transform_indices = @transform_5, window_bounds = array<i64: 1, 1, 32>}, {transform_indices = @transform_6, window_bounds = array<i64: 1, 1, 32>}, {transform_indices = @transform_7, window_bounds = array<i64: 1, 1, 32>}, {transform_indices = @transform_8, window_bounds = array<i64: 1, 32, 64>}, {transform_indices = @transform_9, window_bounds = array<i64: 1, 1, 64>}, {transform_indices = @transform_10, window_bounds = array<i64: 1, 64, 32>}, {transform_indices = @transform_11, window_bounds = array<i64: 1, 1, 32>}, {transform_indices = @transform_12, window_bounds = array<i64: 1, 1, 32>}, {transform_indices = @transform_13, window_bounds = array<i64: 1, 1, 32>}, {transform_indices = @transform_14, window_bounds = array<i64: 2, 8, 32>}]} {
    %c0_i32 = arith.constant 0 : i32
    %0 = arith.cmpi eq, %arg1, %c0_i32 : i32
    %1 = arith.extui %0 : i1 to i32
    %c0_i32_0 = arith.constant 0 : i32
    %2 = arith.cmpi ne, %1, %c0_i32_0 : i32
    scf.if %2 {
      %c0_64 = arith.constant 0 : index
      %c0_65 = arith.constant 0 : index
      %c0_66 = arith.constant 0 : index
      %157 = vector.load %arg2[%c0_64, %c0_65, %c0_66] : memref<2x8x32xf32, #tpu.memory_space<vmem>>, vector<2x8x32xf32>
      %c0_67 = arith.constant 0 : index
      %c0_68 = arith.constant 0 : index
      %c0_69 = arith.constant 0 : index
      %158 = vector.load %arg17[%c0_67, %c0_68, %c0_69] : memref<2x8x32xf32, #tpu.memory_space<vmem>>, vector<2x8x32xf32>
      tpu.vector_store %arg17[%c0_67, %c0_68, %c0_69], %157 {strides = array<i32>} : memref<2x8x32xf32, #tpu.memory_space<vmem>>, vector<2x8x32xf32>,
    } else {
    }
    %c0 = arith.constant 0 : index
    %c0_1 = arith.constant 0 : index
    %c0_2 = arith.constant 0 : index
    %3 = vector.load %arg17[%c0, %c0_1, %c0_2] : memref<2x8x32xf32, #tpu.memory_space<vmem>>, vector<2x8x32xf32>
    %4 = vector.shape_cast %3 : vector<2x8x32xf32> to vector<16x32xf32>
    %5 = arith.truncf %4 : vector<16x32xf32> to vector<16x32xbf16>
    %c0_3 = arith.constant 0 : index
    %c0_4 = arith.constant 0 : index
    %c0_5 = arith.constant 0 : index
    %6 = vector.load %arg4[%c0_3, %c0_4, %c0_5] : memref<1x32x96xbf16, #tpu.memory_space<vmem>>, vector<1x32x96xbf16>
    %7 = vector.shape_cast %6 : vector<1x32x96xbf16> to vector<32x96xbf16>
    %cst = arith.constant dense<0.000000e+00> : vector<16x96xf32>
    %8 = tpu.matmul %5, %7, %cst {dimension_numbers = #tpu.dot_dimension_numbers<[1], [0], [0], [1], [0, 0, 1, 1], [], []>} : vector<16x32xbf16>, vector<32x96xbf16>, vector<16x96xf32> -> vector<16x96xf32>
    %c0_6 = arith.constant 0 : index
    %c0_7 = arith.constant 0 : index
    %c0_8 = arith.constant 0 : index
    %9 = vector.load %arg5[%c0_6, %c0_7, %c0_8] : memref<1x1x96xf32, #tpu.memory_space<vmem>>, vector<1x1x96xf32>
    %10 = vector.shape_cast %9 : vector<1x1x96xf32> to vector<1x96xf32>
    %11 = vector.broadcast %10 : vector<1x96xf32> to vector<16x96xf32>
    %12 = arith.addf %8, %11 : vector<16x96xf32>
    %13 = vector.extract_strided_slice %12 {offsets = [0, 0], sizes = [16, 32], strides = [1, 1]} : vector<16x96xf32> to vector<16x32xf32>
    %14 = vector.extract_strided_slice %12 {offsets = [0, 32], sizes = [16, 32], strides = [1, 1]} : vector<16x96xf32> to vector<16x32xf32>
    %15 = vector.extract_strided_slice %12 {offsets = [0, 64], sizes = [16, 32], strides = [1, 1]} : vector<16x96xf32> to vector<16x32xf32>
    %16 = vector.extract_strided_slice %13 {offsets = [0, 0], sizes = [16, 8], strides = [1, 1]} : vector<16x32xf32> to vector<16x8xf32>
    %17 = vector.shape_cast %16 : vector<16x8xf32> to vector<2x8x8xf32>
    %18 = vector.extract_strided_slice %13 {offsets = [0, 8], sizes = [16, 8], strides = [1, 1]} : vector<16x32xf32> to vector<16x8xf32>
    %19 = vector.shape_cast %18 : vector<16x8xf32> to vector<2x8x8xf32>
    %20 = vector.extract_strided_slice %13 {offsets = [0, 16], sizes = [16, 8], strides = [1, 1]} : vector<16x32xf32> to vector<16x8xf32>
    %21 = vector.shape_cast %20 : vector<16x8xf32> to vector<2x8x8xf32>
    %22 = vector.extract_strided_slice %13 {offsets = [0, 24], sizes = [16, 8], strides = [1, 1]} : vector<16x32xf32> to vector<16x8xf32>
    %23 = vector.shape_cast %22 : vector<16x8xf32> to vector<2x8x8xf32>
    %24 = tpu.concatenate %17, %19, %21, %23 in 0 : vector<2x8x8xf32>, vector<2x8x8xf32>, vector<2x8x8xf32>, vector<2x8x8xf32> -> vector<8x8x8xf32>
    %25 = arith.truncf %24 : vector<8x8x8xf32> to vector<8x8x8xbf16>
    %26 = vector.extract_strided_slice %14 {offsets = [0, 0], sizes = [16, 8], strides = [1, 1]} : vector<16x32xf32> to vector<16x8xf32>
    %27 = vector.shape_cast %26 : vector<16x8xf32> to vector<2x8x8xf32>
    %28 = vector.extract_strided_slice %14 {offsets = [0, 8], sizes = [16, 8], strides = [1, 1]} : vector<16x32xf32> to vector<16x8xf32>
    %29 = vector.shape_cast %28 : vector<16x8xf32> to vector<2x8x8xf32>
    %30 = vector.extract_strided_slice %14 {offsets = [0, 16], sizes = [16, 8], strides = [1, 1]} : vector<16x32xf32> to vector<16x8xf32>
    %31 = vector.shape_cast %30 : vector<16x8xf32> to vector<2x8x8xf32>
    %32 = vector.extract_strided_slice %14 {offsets = [0, 24], sizes = [16, 8], strides = [1, 1]} : vector<16x32xf32> to vector<16x8xf32>
    %33 = vector.shape_cast %32 : vector<16x8xf32> to vector<2x8x8xf32>
    %34 = tpu.concatenate %27, %29, %31, %33 in 0 : vector<2x8x8xf32>, vector<2x8x8xf32>, vector<2x8x8xf32>, vector<2x8x8xf32> -> vector<8x8x8xf32>
    %35 = arith.truncf %34 : vector<8x8x8xf32> to vector<8x8x8xbf16>
    %36 = vector.extract_strided_slice %15 {offsets = [0, 0], sizes = [16, 8], strides = [1, 1]} : vector<16x32xf32> to vector<16x8xf32>
    %37 = vector.shape_cast %36 : vector<16x8xf32> to vector<2x8x8xf32>
    %38 = vector.extract_strided_slice %15 {offsets = [0, 8], sizes = [16, 8], strides = [1, 1]} : vector<16x32xf32> to vector<16x8xf32>
    %39 = vector.shape_cast %38 : vector<16x8xf32> to vector<2x8x8xf32>
    %40 = vector.extract_strided_slice %15 {offsets = [0, 16], sizes = [16, 8], strides = [1, 1]} : vector<16x32xf32> to vector<16x8xf32>
    %41 = vector.shape_cast %40 : vector<16x8xf32> to vector<2x8x8xf32>
    %42 = vector.extract_strided_slice %15 {offsets = [0, 24], sizes = [16, 8], strides = [1, 1]} : vector<16x32xf32> to vector<16x8xf32>
    %43 = vector.shape_cast %42 : vector<16x8xf32> to vector<2x8x8xf32>
    %44 = tpu.concatenate %37, %39, %41, %43 in 0 : vector<2x8x8xf32>, vector<2x8x8xf32>, vector<2x8x8xf32>, vector<2x8x8xf32> -> vector<8x8x8xf32>
    %45 = arith.truncf %44 : vector<8x8x8xf32> to vector<8x8x8xbf16>
    "tpu.trace_start"() <{level = 10 : i32, message = "bqf,bkf->bqk"}> : () -> ()
    %cst_9 = arith.constant dense<0.000000e+00> : vector<8x8x8xf32>
    %46 = tpu.matmul %25, %35, %cst_9 {dimension_numbers = #tpu.dot_dimension_numbers<[2], [2], [1], [1], [0, 0, 0, 1, 1, 1], [0], [0]>} : vector<8x8x8xbf16>, vector<8x8x8xbf16>, vector<8x8x8xf32> -> vector<8x8x8xf32>
    "tpu.trace_stop"() : () -> ()
    %c0_10 = arith.constant 0 : index
    %c0_11 = arith.constant 0 : index
    %c0_12 = arith.constant 0 : index
    %47 = vector.load %arg3[%c0_10, %c0_11, %c0_12] : memref<2x1x8xf32, #tpu.memory_space<vmem>>, vector<2x1x8xf32>
    %48 = tpu.concatenate %47, %47, %47, %47 in 0 : vector<2x1x8xf32>, vector<2x1x8xf32>, vector<2x1x8xf32>, vector<2x1x8xf32> -> vector<8x1x8xf32>
    %49 = vector.broadcast %48 : vector<8x1x8xf32> to vector<8x8x8xf32>
    %50 = arith.addf %46, %49 : vector<8x8x8xf32>
    %cst_13 = arith.constant dense<0xFF800000> : vector<8x8xf32>
    %51 = vector.multi_reduction <maximumf>, %50, %cst_13 [2] : vector<8x8x8xf32> to vector<8x8xf32>
    %52 = vector.shape_cast %51 : vector<8x8xf32> to vector<8x8x1xf32>
    %53 = vector.broadcast %52 : vector<8x8x1xf32> to vector<8x8x8xf32>
    %54 = arith.subf %50, %53 : vector<8x8x8xf32>
    %55 = math.exp %54 : vector<8x8x8xf32>
    %cst_14 = arith.constant dense<0.000000e+00> : vector<8x8xf32>
    %56 = vector.multi_reduction <add>, %55, %cst_14 [2] : vector<8x8x8xf32> to vector<8x8xf32>
    %57 = vector.shape_cast %56 : vector<8x8xf32> to vector<8x8x1xf32>
    %58 = tpu.reciprocal %57 {approx = true} : vector<8x8x1xf32> -> vector<8x8x1xf32>
    %59 = vector.broadcast %58 : vector<8x8x1xf32> to vector<8x8x8xf32>
    %60 = arith.mulf %55, %59 : vector<8x8x8xf32>
    %61 = arith.truncf %60 : vector<8x8x8xf32> to vector<8x8x8xbf16>
    "tpu.trace_start"() <{level = 10 : i32, message = "bqk,bkf->bqf"}> : () -> ()
    %cst_15 = arith.constant dense<0.000000e+00> : vector<8x8x8xf32>
    %62 = tpu.matmul %61, %45, %cst_15 {dimension_numbers = #tpu.dot_dimension_numbers<[2], [1], [1], [2], [0, 0, 0, 1, 1, 2], [0], [0]>} : vector<8x8x8xbf16>, vector<8x8x8xbf16>, vector<8x8x8xf32> -> vector<8x8x8xf32>
    "tpu.trace_stop"() : () -> ()
    %63 = vector.extract_strided_slice %62 {offsets = [0, 0, 0], sizes = [2, 8, 8], strides = [1, 1, 1]} : vector<8x8x8xf32> to vector<2x8x8xf32>
    %64 = vector.shape_cast %63 : vector<2x8x8xf32> to vector<16x8xf32>
    %65 = vector.extract_strided_slice %62 {offsets = [2, 0, 0], sizes = [2, 8, 8], strides = [1, 1, 1]} : vector<8x8x8xf32> to vector<2x8x8xf32>
    %66 = vector.shape_cast %65 : vector<2x8x8xf32> to vector<16x8xf32>
    %67 = vector.extract_strided_slice %62 {offsets = [4, 0, 0], sizes = [2, 8, 8], strides = [1, 1, 1]} : vector<8x8x8xf32> to vector<2x8x8xf32>
    %68 = vector.shape_cast %67 : vector<2x8x8xf32> to vector<16x8xf32>
    %69 = vector.extract_strided_slice %62 {offsets = [6, 0, 0], sizes = [2, 8, 8], strides = [1, 1, 1]} : vector<8x8x8xf32> to vector<2x8x8xf32>
    %70 = vector.shape_cast %69 : vector<2x8x8xf32> to vector<16x8xf32>
    %71 = tpu.concatenate %64, %66, %68, %70 in 1 : vector<16x8xf32>, vector<16x8xf32>, vector<16x8xf32>, vector<16x8xf32> -> vector<16x32xf32>
    %72 = arith.truncf %71 : vector<16x32xf32> to vector<16x32xbf16>
    %c0_16 = arith.constant 0 : index
    %c0_17 = arith.constant 0 : index
    %c0_18 = arith.constant 0 : index
    %73 = vector.load %arg6[%c0_16, %c0_17, %c0_18] : memref<1x32x32xbf16, #tpu.memory_space<vmem>>, vector<1x32x32xbf16>
    %74 = vector.shape_cast %73 : vector<1x32x32xbf16> to vector<32x32xbf16>
    %cst_19 = arith.constant dense<0.000000e+00> : vector<16x32xf32>
    %75 = tpu.matmul %72, %74, %cst_19 {dimension_numbers = #tpu.dot_dimension_numbers<[1], [0], [0], [1], [0, 0, 1, 1], [], []>} : vector<16x32xbf16>, vector<32x32xbf16>, vector<16x32xf32> -> vector<16x32xf32>
    %c0_20 = arith.constant 0 : index
    %c0_21 = arith.constant 0 : index
    %c0_22 = arith.constant 0 : index
    %76 = vector.load %arg7[%c0_20, %c0_21, %c0_22] : memref<1x1x32xf32, #tpu.memory_space<vmem>>, vector<1x1x32xf32>
    %77 = vector.shape_cast %76 : vector<1x1x32xf32> to vector<1x32xf32>
    %78 = vector.broadcast %77 : vector<1x32xf32> to vector<16x32xf32>
    %79 = arith.addf %75, %78 : vector<16x32xf32>
    %80 = arith.addf %4, %79 : vector<16x32xf32>
    %c0_23 = arith.constant 0 : index
    %c0_24 = arith.constant 0 : index
    %c0_25 = arith.constant 0 : index
    %81 = vector.load %arg8[%c0_23, %c0_24, %c0_25] : memref<1x1x32xf32, #tpu.memory_space<vmem>>, vector<1x1x32xf32>
    %82 = vector.shape_cast %81 : vector<1x1x32xf32> to vector<1x32xf32>
    %c0_26 = arith.constant 0 : index
    %c0_27 = arith.constant 0 : index
    %c0_28 = arith.constant 0 : index
    %83 = vector.load %arg9[%c0_26, %c0_27, %c0_28] : memref<1x1x32xf32, #tpu.memory_space<vmem>>, vector<1x1x32xf32>
    %84 = vector.shape_cast %83 : vector<1x1x32xf32> to vector<1x32xf32>
    %cst_29 = arith.constant dense<0.000000e+00> : vector<16xf32>
    %85 = vector.multi_reduction <add>, %80, %cst_29 [1] : vector<16x32xf32> to vector<16xf32>
    %86 = vector.shape_cast %85 : vector<16xf32> to vector<16x1xf32>
    %cst_30 = arith.constant 3.200000e+01 : f32
    %87 = vector.broadcast %cst_30 : f32 to vector<16x1xf32>
    %88 = arith.divf %86, %87 : vector<16x1xf32>
    %89 = arith.mulf %80, %80 : vector<16x32xf32>
    %cst_31 = arith.constant dense<0.000000e+00> : vector<16xf32>
    %90 = vector.multi_reduction <add>, %89, %cst_31 [1] : vector<16x32xf32> to vector<16xf32>
    %91 = vector.shape_cast %90 : vector<16xf32> to vector<16x1xf32>
    %cst_32 = arith.constant 3.200000e+01 : f32
    %92 = vector.broadcast %cst_32 : f32 to vector<16x1xf32>
    %93 = arith.divf %91, %92 : vector<16x1xf32>
    %94 = arith.mulf %88, %88 : vector<16x1xf32>
    %95 = arith.subf %93, %94 : vector<16x1xf32>
    %cst_33 = arith.constant 9.99999974E-6 : f32
    %96 = vector.broadcast %cst_33 : f32 to vector<16x1xf32>
    %97 = arith.addf %95, %96 : vector<16x1xf32>
    %98 = math.rsqrt %97 : vector<16x1xf32>
    %99 = vector.broadcast %88 : vector<16x1xf32> to vector<16x32xf32>
    %100 = arith.subf %80, %99 : vector<16x32xf32>
    %101 = vector.broadcast %98 : vector<16x1xf32> to vector<16x32xf32>
    %102 = arith.mulf %100, %101 : vector<16x32xf32>
    %103 = vector.broadcast %82 : vector<1x32xf32> to vector<16x32xf32>
    %104 = arith.mulf %102, %103 : vector<16x32xf32>
    %105 = vector.broadcast %84 : vector<1x32xf32> to vector<16x32xf32>
    %106 = arith.addf %104, %105 : vector<16x32xf32>
    %107 = arith.truncf %106 : vector<16x32xf32> to vector<16x32xbf16>
    %c0_34 = arith.constant 0 : index
    %c0_35 = arith.constant 0 : index
    %c0_36 = arith.constant 0 : index
    %108 = vector.load %arg10[%c0_34, %c0_35, %c0_36] : memref<1x32x64xbf16, #tpu.memory_space<vmem>>, vector<1x32x64xbf16>
    %109 = vector.shape_cast %108 : vector<1x32x64xbf16> to vector<32x64xbf16>
    %cst_37 = arith.constant dense<0.000000e+00> : vector<16x64xf32>
    %110 = tpu.matmul %107, %109, %cst_37 {dimension_numbers = #tpu.dot_dimension_numbers<[1], [0], [0], [1], [0, 0, 1, 1], [], []>} : vector<16x32xbf16>, vector<32x64xbf16>, vector<16x64xf32> -> vector<16x64xf32>
    %c0_38 = arith.constant 0 : index
    %c0_39 = arith.constant 0 : index
    %c0_40 = arith.constant 0 : index
    %111 = vector.load %arg11[%c0_38, %c0_39, %c0_40] : memref<1x1x64xf32, #tpu.memory_space<vmem>>, vector<1x1x64xf32>
    %112 = vector.shape_cast %111 : vector<1x1x64xf32> to vector<1x64xf32>
    %113 = vector.broadcast %112 : vector<1x64xf32> to vector<16x64xf32>
    %114 = arith.addf %110, %113 : vector<16x64xf32>
    %cst_41 = arith.constant 0.000000e+00 : f32
    %115 = vector.broadcast %cst_41 : f32 to vector<16x64xf32>
    %116 = arith.maximumf %114, %115 : vector<16x64xf32>
    %117 = arith.truncf %116 : vector<16x64xf32> to vector<16x64xbf16>
    %c0_42 = arith.constant 0 : index
    %c0_43 = arith.constant 0 : index
    %c0_44 = arith.constant 0 : index
    %118 = vector.load %arg12[%c0_42, %c0_43, %c0_44] : memref<1x64x32xbf16, #tpu.memory_space<vmem>>, vector<1x64x32xbf16>
    %119 = vector.shape_cast %118 : vector<1x64x32xbf16> to vector<64x32xbf16>
    %cst_45 = arith.constant dense<0.000000e+00> : vector<16x32xf32>
    %120 = tpu.matmul %117, %119, %cst_45 {dimension_numbers = #tpu.dot_dimension_numbers<[1], [0], [0], [1], [0, 0, 1, 1], [], []>} : vector<16x64xbf16>, vector<64x32xbf16>, vector<16x32xf32> -> vector<16x32xf32>
    %c0_46 = arith.constant 0 : index
    %c0_47 = arith.constant 0 : index
    %c0_48 = arith.constant 0 : index
    %121 = vector.load %arg13[%c0_46, %c0_47, %c0_48] : memref<1x1x32xf32, #tpu.memory_space<vmem>>, vector<1x1x32xf32>
    %122 = vector.shape_cast %121 : vector<1x1x32xf32> to vector<1x32xf32>
    %123 = vector.broadcast %122 : vector<1x32xf32> to vector<16x32xf32>
    %124 = arith.addf %120, %123 : vector<16x32xf32>
    %125 = arith.addf %106, %124 : vector<16x32xf32>
    %c0_49 = arith.constant 0 : index
    %c0_50 = arith.constant 0 : index
    %c0_51 = arith.constant 0 : index
    %126 = vector.load %arg14[%c0_49, %c0_50, %c0_51] : memref<1x1x32xf32, #tpu.memory_space<vmem>>, vector<1x1x32xf32>
    %127 = vector.shape_cast %126 : vector<1x1x32xf32> to vector<1x32xf32>
    %c0_52 = arith.constant 0 : index
    %c0_53 = arith.constant 0 : index
    %c0_54 = arith.constant 0 : index
    %128 = vector.load %arg15[%c0_52, %c0_53, %c0_54] : memref<1x1x32xf32, #tpu.memory_space<vmem>>, vector<1x1x32xf32>
    %129 = vector.shape_cast %128 : vector<1x1x32xf32> to vector<1x32xf32>
    %cst_55 = arith.constant dense<0.000000e+00> : vector<16xf32>
    %130 = vector.multi_reduction <add>, %125, %cst_55 [1] : vector<16x32xf32> to vector<16xf32>
    %131 = vector.shape_cast %130 : vector<16xf32> to vector<16x1xf32>
    %cst_56 = arith.constant 3.200000e+01 : f32
    %132 = vector.broadcast %cst_56 : f32 to vector<16x1xf32>
    %133 = arith.divf %131, %132 : vector<16x1xf32>
    %134 = arith.mulf %125, %125 : vector<16x32xf32>
    %cst_57 = arith.constant dense<0.000000e+00> : vector<16xf32>
    %135 = vector.multi_reduction <add>, %134, %cst_57 [1] : vector<16x32xf32> to vector<16xf32>
    %136 = vector.shape_cast %135 : vector<16xf32> to vector<16x1xf32>
    %cst_58 = arith.constant 3.200000e+01 : f32
    %137 = vector.broadcast %cst_58 : f32 to vector<16x1xf32>
    %138 = arith.divf %136, %137 : vector<16x1xf32>
    %139 = arith.mulf %133, %133 : vector<16x1xf32>
    %140 = arith.subf %138, %139 : vector<16x1xf32>
    %cst_59 = arith.constant 9.99999974E-6 : f32
    %141 = vector.broadcast %cst_59 : f32 to vector<16x1xf32>
    %142 = arith.addf %140, %141 : vector<16x1xf32>
    %143 = math.rsqrt %142 : vector<16x1xf32>
    %144 = vector.broadcast %133 : vector<16x1xf32> to vector<16x32xf32>
    %145 = arith.subf %125, %144 : vector<16x32xf32>
    %146 = vector.broadcast %143 : vector<16x1xf32> to vector<16x32xf32>
    %147 = arith.mulf %145, %146 : vector<16x32xf32>
    %148 = vector.broadcast %127 : vector<1x32xf32> to vector<16x32xf32>
    %149 = arith.mulf %147, %148 : vector<16x32xf32>
    %150 = vector.broadcast %129 : vector<1x32xf32> to vector<16x32xf32>
    %151 = arith.addf %149, %150 : vector<16x32xf32>
    %152 = vector.shape_cast %151 : vector<16x32xf32> to vector<2x8x32xf32>
    %c0_60 = arith.constant 0 : index
    %c0_61 = arith.constant 0 : index
    %c0_62 = arith.constant 0 : index
    %153 = vector.load %arg17[%c0_60, %c0_61, %c0_62] : memref<2x8x32xf32, #tpu.memory_space<vmem>>, vector<2x8x32xf32>
    tpu.vector_store %arg17[%c0_60, %c0_61, %c0_62], %152 {strides = array<i32>} : memref<2x8x32xf32, #tpu.memory_space<vmem>>, vector<2x8x32xf32>,
    %c1_i32 = arith.constant 1 : i32
    %154 = arith.cmpi eq, %arg1, %c1_i32 : i32
    %155 = arith.extui %154 : i1 to i32
    %c0_i32_63 = arith.constant 0 : i32
    %156 = arith.cmpi ne, %155, %c0_i32_63 : i32
    scf.if %156 {
      %c0_64 = arith.constant 0 : index
      %c0_65 = arith.constant 0 : index
      %c0_66 = arith.constant 0 : index
      %157 = vector.load %arg16[%c0_64, %c0_65, %c0_66] : memref<2x8x32xf32, #tpu.memory_space<vmem>>, vector<2x8x32xf32>
      tpu.vector_store %arg16[%c0_64, %c0_65, %c0_66], %152 {strides = array<i32>} : memref<2x8x32xf32, #tpu.memory_space<vmem>>, vector<2x8x32xf32>,
    } else {
    }
    return
  }
  func.func @transform_0(%arg0: i32, %arg1: i32) -> (i32, i32, i32) {
    %c0_i32 = arith.constant 0 : i32
    %c0_i32_0 = arith.constant 0 : i32
    %c0_i32_1 = arith.constant 0 : i32
    return %arg0, %c0_i32, %c0_i32_0 : i32, i32, i32
  }
  func.func @transform_1(%arg0: i32, %arg1: i32) -> (i32, i32, i32) {
    %c0_i32 = arith.constant 0 : i32
    %c0_i32_0 = arith.constant 0 : i32
    %c0_i32_1 = arith.constant 0 : i32
    return %arg0, %c0_i32, %c0_i32_0 : i32, i32, i32
  }
  func.func @transform_2(%arg0: i32, %arg1: i32) -> (i32, i32, i32) {
    %c0_i32 = arith.constant 0 : i32
    %c0_i32_0 = arith.constant 0 : i32
    %c0_i32_1 = arith.constant 0 : i32
    return %arg1, %c0_i32, %c0_i32_0 : i32, i32, i32
  }
  func.func @transform_3(%arg0: i32, %arg1: i32) -> (i32, i32, i32) {
    %c0_i32 = arith.constant 0 : i32
    %c0_i32_0 = arith.constant 0 : i32
    %c0_i32_1 = arith.constant 0 : i32
    return %arg1, %c0_i32, %c0_i32_0 : i32, i32, i32
  }
  func.func @transform_4(%arg0: i32, %arg1: i32) -> (i32, i32, i32) {
    %c0_i32 = arith.constant 0 : i32
    %c0_i32_0 = arith.constant 0 : i32
    %c0_i32_1 = arith.constant 0 : i32
    return %arg1, %c0_i32, %c0_i32_0 : i32, i32, i32
  }
  func.func @transform_5(%arg0: i32, %arg1: i32) -> (i32, i32, i32) {
    %c0_i32 = arith.constant 0 : i32
    %c0_i32_0 = arith.constant 0 : i32
    %c0_i32_1 = arith.constant 0 : i32
    return %arg1, %c0_i32, %c0_i32_0 : i32, i32, i32
  }
  func.func @transform_6(%arg0: i32, %arg1: i32) -> (i32, i32, i32) {
    %c0_i32 = arith.constant 0 : i32
    %c0_i32_0 = arith.constant 0 : i32
    %c0_i32_1 = arith.constant 0 : i32
    return %arg1, %c0_i32, %c0_i32_0 : i32, i32, i32
  }
  func.func @transform_7(%arg0: i32, %arg1: i32) -> (i32, i32, i32) {
    %c0_i32 = arith.constant 0 : i32
    %c0_i32_0 = arith.constant 0 : i32
    %c0_i32_1 = arith.constant 0 : i32
    return %arg1, %c0_i32, %c0_i32_0 : i32, i32, i32
  }
  func.func @transform_8(%arg0: i32, %arg1: i32) -> (i32, i32, i32) {
    %c0_i32 = arith.constant 0 : i32
    %c0_i32_0 = arith.constant 0 : i32
    %c0_i32_1 = arith.constant 0 : i32
    return %arg1, %c0_i32, %c0_i32_0 : i32, i32, i32
  }
  func.func @transform_9(%arg0: i32, %arg1: i32) -> (i32, i32, i32) {
    %c0_i32 = arith.constant 0 : i32
    %c0_i32_0 = arith.constant 0 : i32
    %c0_i32_1 = arith.constant 0 : i32
    return %arg1, %c0_i32, %c0_i32_0 : i32, i32, i32
  }
  func.func @transform_10(%arg0: i32, %arg1: i32) -> (i32, i32, i32) {
    %c0_i32 = arith.constant 0 : i32
    %c0_i32_0 = arith.constant 0 : i32
    %c0_i32_1 = arith.constant 0 : i32
    return %arg1, %c0_i32, %c0_i32_0 : i32, i32, i32
  }
  func.func @transform_11(%arg0: i32, %arg1: i32) -> (i32, i32, i32) {
    %c0_i32 = arith.constant 0 : i32
    %c0_i32_0 = arith.constant 0 : i32
    %c0_i32_1 = arith.constant 0 : i32
    return %arg1, %c0_i32, %c0_i32_0 : i32, i32, i32
  }
  func.func @transform_12(%arg0: i32, %arg1: i32) -> (i32, i32, i32) {
    %c0_i32 = arith.constant 0 : i32
    %c0_i32_0 = arith.constant 0 : i32
    %c0_i32_1 = arith.constant 0 : i32
    return %arg1, %c0_i32, %c0_i32_0 : i32, i32, i32
  }
  func.func @transform_13(%arg0: i32, %arg1: i32) -> (i32, i32, i32) {
    %c0_i32 = arith.constant 0 : i32
    %c0_i32_0 = arith.constant 0 : i32
    %c0_i32_1 = arith.constant 0 : i32
    return %arg1, %c0_i32, %c0_i32_0 : i32, i32, i32
  }
  func.func @transform_14(%arg0: i32, %arg1: i32) -> (i32, i32, i32) {
    %c0_i32 = arith.constant 0 : i32
    %c0_i32_0 = arith.constant 0 : i32
    %c0_i32_1 = arith.constant 0 : i32
    return %arg0, %c0_i32, %c0_i32_0 : i32, i32, i32
  }
}

</mosaic_0001>

<bundles_post_ra>
// kernel: tpu_custom_call.1
= control target key start
LH: loop header
LB: loop body
LE: loop exit
PB: predicated region body
PF: predicated region fallthrough
CT: control target
= control target key end

     0   :  { %s3704_s0 = inlined_call_operand.hbm [shape: f32[2,8,32], index: 0, kind: input, shape index: {}]   ;;  %s3705_s1 = inlined_call_operand.vmem [shape: f32[2,1,8], index: 1, kind: input, shape index: {}]   ;;  %s3706_s2 = inlined_call_operand.vmem [shape: bf16[2,32,96], index: 2, kind: input, shape index: {}]   ;;  %s3707_s3 = inlined_call_operand.vmem [shape: f32[2,1,96], index: 3, kind: input, shape index: {}]   ;;  %s3708_s4 = inlined_call_operand.vmem [shape: bf16[2,32,32], index: 4, kind: input, shape index: {}]   ;;  %s3709_s5 = inlined_call_operand.hbm [shape: f32[2,1,32], index: 5, kind: input, shape index: {}]   ;;  %s3710_s6 = inlined_call_operand.hbm [shape: f32[2,1,32], index: 6, kind: input, shape index: {}]   ;;  %s3711_s7 = inlined_call_operand.hbm [shape: f32[2,1,32], index: 7, kind: input, shape index: {}]   ;;  %s3712_s8 = inlined_call_operand.vmem [shape: bf16[2,32,64], index: 8, kind: input, shape index: {}]   ;;  %s3713_s9 = inlined_call_operand.hbm [shape: f32[2,1,64], index: 9, kind: input, shape index: {}]   ;;  %s3714_s10 = inlined_call_operand.vmem [shape: bf16[2,64,32], index: 10, kind: input, shape index: {}]   ;;  %s3715_s11 = inlined_call_operand.vmem [shape: f32[2,1,32], index: 11, kind: input, shape index: {}]   ;;  %s3716_s12 = inlined_call_operand.vmem [shape: f32[2,1,32], index: 12, kind: input, shape index: {}]   ;;  %s3717_s13 = inlined_call_operand.vmem [shape: f32[2,1,32], index: 13, kind: input, shape index: {}]   ;;  %s3718_s14 = inlined_call_operand.hbm [shape: f32[2,8,32], index: 14, kind: output, shape index: {}]  }
   0x1   :  { %3732 = sst [smem:[#allocation22_spill]] %s3704_s0 }
   0x2   :  { %3733 = sst [smem:[#allocation23_spill]] %s3705_s1 }
   0x3   :  { %3734 = sst [smem:[#allocation24_spill]] %s3706_s2 }
   0x4   :  { %3735 = sst [smem:[#allocation25_spill]] %s3708_s4 }
   0x5   :  { %3736 = sst [smem:[#allocation26_spill]] %s3709_s5 }
   0x6   :  { %3737 = sst [smem:[#allocation27_spill]] %s3711_s7 }
   0x7   :  { %3738 = sst [smem:[#allocation28_spill]] %s3712_s8 }
   0x8   :  { %3739 = sst [smem:[#allocation29_spill]] %s3714_s10 }
   0x9   :  { %3740 = sst [smem:[#allocation30_spill]] %s3715_s11 }
   0xa   :  { %3741 = sst [smem:[#allocation31_spill]] %s3716_s12 }
   0xb   :  { %3742 = sst [smem:[#allocation32_spill]] %s3717_s13 }
   0xc   :  { %3743 = sst [smem:[#allocation33_spill]] %s3718_s14 }
   0xd   :  { %19 = vsyncpa [#allocation4], 0 }
   0xe   :  { %20 = vsyncpa [#allocation7], 0 }
   0xf   :  { %22 = vsyncpa [#allocation7 + $0x1], 0 }
  0x10   :  { %23 = vsyncpa [#allocation10], 0 }
  0x11   :  { %25 = vsyncpa [#allocation10 + $0x1], 0 }
  0x12   :  { %26 = vsyncpa [#allocation5], 0  ;;  %s3116_s29 = smov 0   ;;  %s3118_s30 = smov 0  }
  0x13   :  { %s3120_s15 = smov 0   ;;  %s3122_s16 = smov 0  }
  0x14   :  { %s3124_s17 = smov 0   ;;  %s3126_s18 = smov 0  }
  0x15 LB: > { %3744 = sst [smem:[#allocation17_spill]] %s3008_s15  ;;  %s41_s19 = sadd.s32 1, %s3016_s17  ;;  %s3020_s18 = sphi %s3126_s18, %s32_s18   ;;  %s3016_s17 = sphi %s3124_s17, %s3787_s17   ;;  %s3012_s16 = sphi %s3122_s16, %s3786_s16   ;;  %s3008_s15 = sphi %s3120_s15, %s3785_s15   ;;  %s3004_s30 = sphi %s3118_s30, %s3789_s30   ;;  %s3000_s29 = sphi %s3116_s29, %s3788_s29  }
  0x16   : > { %3745 = sst [smem:[#allocation18_spill]] %s3016_s17  ;;  %s181_s20 = sadd.s32 1, %s3008_s15 }
  0x17   : > { %3746 = sst [smem:[#allocation19_spill]] %s3020_s18  ;;  %p42_p0 = scmp.ge.s32.totalorder %s41_s19, 2 }
  0x18   : > { %p188_p1 = scmp.ne.s32.totalorder %s3008_s15, %s3004_s30  ;;  %p189_p2 = scmp.eq.s32.totalorder %s3020_s18, 0 }
  0x19   : > { %s3791_s19 = smov (%p42_p0, %s41_s19), 0  ;;  %p2637_p4 = scmp.lt.s32.totalorder %s3020_s18, 2 }
  0x1a   : > { %3747 = sst [smem:[#allocation20_spill]] %s3791_s19  ;;  %p190_p3 = por %p189_p2, %p188_p1 }
  0x1b   : > { %s178_s21 = ssub.s32 %s3016_s17, %s3791_s19  ;;  %s3158_s23 = sand.u32 1, %s3008_s15  }
  0x1c   : > { %p179_p5 = scmp.eq.s32.totalorder %s178_s21, 0  ;;  %s3161_s24 = sshll.u32 %s3016_s17, 4 }
  0x1d   : > { %s3749_s5 = sld [smem:[#allocation26_spill]]  ;;  %s501_s19 = scalar_lea.vmem [#allocation6], %s3158_s23 }
  0x1e   : > { %s3164_s25 = scalar_select %p179_p5, %s3008_s15, %s181_s20  }
  0x1f   : > { %s508_s22 = sshll.u32 %s501_s19, 4  ;;  %p3173_p6 = pnand %p2637_p4, %p190_p3  ;;  %s3177_s22 = int_to_ptr.vmem [resolvable:$true] %s508_s22 }
  0x20   : > { %3748 = sst [smem:[#allocation21_spill]] %s3164_s25  ;;  %s3751_s20 = sand.u32 1, %s3020_s18  }
  0x21   : > { %s3750_s21 = scalar_select %p3173_p6, 1, 0 }
  0x22   : > { %s3181_s17 = scalar_lea.sflag [#allocation7], %s3751_s20  ;;  %p3187_p8 = pneg %p3173_p6 }
  0x23   : > { %s3170_s28 = scalar_lea.hbm %s3749_s5, %s3161_s24  ;;  %s2789_s15 = scalar_lea.hbm %s3749_s5, 32 }
  0x24   : > { %s2784_s25 = scalar_lea.hbm %s3170_s28, 16  ;;  %p2790_p11 = scmp.lt.u32.totalorder %s3170_s28, %s3749_s5 }
  0x25   : > { %p2785_p7 = scmp.ne.s32.totalorder %s3170_s28, %s2784_s25  ;;  %p2791_p12 = scmp.lt.u32.totalorder %s2789_s15, %s2784_s25 }
  0x26   : > { %s3752_s26 = scalar_select %p3187_p8, 1, 0 }
  0x27   : > { %p2787_p9 = pnand %p3187_p8, %p2785_p7  ;;  %p2792_p13 = por %p2791_p12, %p2790_p11 }
  0x28   : > { %p2793_p0 = scmp.lt.u32.totalorder %s2784_s25, %s3170_s28 }
  0x29   : > { %p2788_p10 = pneg %p2787_p9 }
  0x2a   : > { %p2794_p1 = por %p2793_p0, %p2792_p13 }
  0x2c   : > { %p2795_p2 = pnand %p2794_p1, %p2788_p10 }
  0x2e   : > { %2798 = shalt.err (!%p2795_p2)
}
  0x2f   : > { %s2799_s20 = scalar_lea.vmem %s3177_s22, 16  ;;  %s3022_s19 = smov [#allocation6]  }
  0x30   : > { %p2800_p3 = scmp.ne.s32.totalorder %s3177_s22, %s2799_s20  ;;  %s2804_s27 = sshll.u32 %s3022_s19, 4  ;;  %s2805_s27 = int_to_ptr.vmem [resolvable:$false] %s2804_s27 }
  0x31   : > { %s2806_s1 = scalar_lea.vmem %s2805_s27, 32  ;;  %p2807_p7 = scmp.lt.s32.totalorder %s3177_s22, %s2805_s27 }
  0x32   : > { %p2802_p4 = pnand %p2800_p3, %p3187_p8  ;;  %p2808_p9 = scmp.lt.s32.totalorder %s2806_s1, %s2799_s20 }
  0x34   : > { %p2803_p5 = pneg %p2802_p4  ;;  %p2809_p11 = por %p2808_p9, %p2807_p7 }
  0x36   : > { %p2810_p12 = pnand %p2809_p11, %p2803_p5 }
  0x38   : > { %2813 = shalt.err (!%p2810_p12)
}
  0x39   : > { %2626 = dma.hbm_to_vmem [thread:$0]  (!%p3173_p6), %s3170_s28, 16, %s3177_s22, %s3181_s17  }
  0x3a   : > { %s3753_s7 = sld [smem:[#allocation27_spill]]  ;;  %s535_s20 = scalar_lea.vmem [#allocation9], %s3158_s23 }
  0x3b   : > { %s542_s19 = sshll.u32 %s535_s20, 4  ;;  %s3754_s27 = sand.u32 1, %s3020_s18   ;;  %s543_s19 = int_to_ptr.vmem [resolvable:$true] %s542_s19 }
  0x3c   : > { %s3220_s1 = scalar_lea.sflag [#allocation10], %s3754_s27 }
  0x40   : > { %s3215_s25 = scalar_lea.hbm %s3753_s7, %s3161_s24  ;;  %s2819_s14 = scalar_lea.hbm %s3753_s7, 32 }
  0x41   : > { %s2814_s5 = scalar_lea.hbm %s3215_s25, 16  ;;  %p2820_p1 = scmp.lt.u32.totalorder %s3215_s25, %s3753_s7 }
  0x42   : > { %p2815_p10 = scmp.ne.s32.totalorder %s3215_s25, %s2814_s5  ;;  %p2821_p2 = scmp.lt.u32.totalorder %s2819_s14, %s2814_s5 }
  0x43   : > { %p2823_p4 = scmp.lt.u32.totalorder %s2814_s5, %s3215_s25 }
  0x44   : > { %p2817_p13 = pnand %p2815_p10, %p3187_p8  ;;  %p2822_p3 = por %p2821_p2, %p2820_p1 }
  0x46   : > { %p2818_p0 = pneg %p2817_p13  ;;  %p2824_p5 = por %p2823_p4, %p2822_p3 }
  0x48   : > { %p2825_p7 = pnand %p2824_p5, %p2818_p0 }
  0x4a   : > { %2828 = shalt.err (!%p2825_p7)
}
  0x4b   : > { %s2829_s20 = scalar_lea.vmem %s543_s19, 16  ;;  %s3023_s27 = smov [#allocation9]  }
  0x4c   : > { %p2830_p9 = scmp.ne.s32.totalorder %s543_s19, %s2829_s20  ;;  %s2834_s12 = sshll.u32 %s3023_s27, 4  ;;  %s2835_s12 = int_to_ptr.vmem [resolvable:$false] %s2834_s12 }
  0x4d   : > { %s2836_s22 = scalar_lea.vmem %s2835_s12, 32  ;;  %p2837_p10 = scmp.lt.s32.totalorder %s543_s19, %s2835_s12 }
  0x4e   : > { %p2832_p11 = pnand %p2830_p9, %p3187_p8  ;;  %p2838_p13 = scmp.lt.s32.totalorder %s2836_s22, %s2829_s20 }
  0x50   : > { %p2833_p12 = pneg %p2832_p11  ;;  %p2839_p6 = por %p2838_p13, %p2837_p10 }
  0x52   : > { %p2840_p1 = pnand %p2839_p6, %p2833_p12 }
  0x54   : > { %2843 = shalt.err (!%p2840_p1)
}
  0x55   : > { %p3755_p2 = scmp.ne.s32.totalorder %s3750_s21, 0  ;;  %s3241_s5 = sadd.s32 4294967295, %s3020_s18  }
  0x56   : > { %p194_p0 = scmp.ne.s32.totalorder %s3004_s30, %s3000_s29  ;;  %p3727_p6 = scmp.eq.s32.totalorder %s3241_s5, 0 }
  0x57   : > { %2632 = dma.hbm_to_vmem [thread:$0]  (!%p3755_p2), %s3215_s25, 16, %s543_s19, %s3220_s1  }
  0x58   : > { %p2357_p3 = scmp.ge.s32.totalorder %s3020_s18, 1  ;;  %p439_p4 = scmp.lt.s32.totalorder %s3020_s18, 3 }
  0x59   : > { %p3250_p5 = por %p3727_p6, %p194_p0  ;;  %s3024_s25 = smov [#allocation3]  }
  0x5a   : > { %p3254_p7 = pnand %p2357_p3, %p439_p4  ;;  %s454_s19 = sshll.u32 %s3024_s25, 4  ;;  %s455_s19 = int_to_ptr.vmem [resolvable:$true] %s454_s19 }
  0x5b   : > { %s3756_s12 = scalar_select %p3250_p5, 1, 0 }
  0x5c   : > { %s3757_s13 = scalar_select %p3254_p7, 1, 0 }
  0x5d   : > { %p2619_p9 = pneg %p3254_p7  ;;  %s3270_s15 = scalar_lea.hbm %s3710_s6, %s3161_s24 }
  0x5e   : > { %s518_s20 = scalar_lea.vmem [#allocation8], %s3158_s23  ;;  %s3759_s0 = sld [smem:[#allocation22_spill]] }
  0x5f   : > { %p3262_p11 = pnand %p2619_p9, %p3727_p6  ;;  %s525_s27 = sshll.u32 %s518_s20, 4  ;;  %s3273_s27 = int_to_ptr.vmem [resolvable:$true] %s525_s27 }
  0x61   : > { %p2846_p10 = pneg %p3262_p11 }
  0x64   : > { %s2844_s7 = scalar_lea.hbm %s3759_s0, 256 }
  0x65   : > { %p2845_p12 = scmp.ne.s32.totalorder %s3759_s0, %s2844_s7  ;;  %p2851_p0 = scmp.lt.u32.totalorder %s2844_s7, %s3759_s0 }
  0x67   : > { %p2847_p13 = pnand %p2846_p10, %p2845_p12 }
  0x69   : > { %p2848_p1 = pneg %p2847_p13 }
  0x6b   : > { %p2853_p3 = pnand %p2851_p0, %p2848_p1 }
  0x6d   : > { %2856 = shalt.err (!%p2853_p3)
}
  0x6e   : > { %s2857_s20 = scalar_lea.vmem %s455_s19, 256  ;;  %p2865_p5 = scmp.lt.s32.totalorder %s455_s19, %s455_s19 }
  0x6f   : > { %p2858_p4 = scmp.ne.s32.totalorder %s455_s19, %s2857_s20  ;;  %p2866_p7 = scmp.lt.s32.totalorder %s2857_s20, %s2857_s20 }
  0x71   : > { %p2860_p9 = pnand %p2858_p4, %p2846_p10  ;;  %p2867_p2 = por %p2866_p7, %p2865_p5 }
  0x73   : > { %p2861_p6 = pneg %p2860_p9 }
  0x75   : > { %p2868_p8 = pnand %p2867_p2, %p2861_p6 }
  0x77   : > { %2871 = shalt.err (!%p2868_p8)
}
  0x78   : > { %s3025_s11 = smov 128   ;;  %s3026_s18 = smov 8  }
  0x79   : > { %2622 = dma.hbm_to_vmem [thread:$0]  (!%p3262_p11), %s3759_s0, 256, %s455_s19, [#allocation4], %s3025_s11, %s3025_s11, %s3026_s18  }
  0x7a   : > { %s2872_s25 = scalar_lea.hbm %s3270_s15, 16  ;;  %p3760_p10 = scmp.ne.s32.totalorder %s3752_s26, 0 }
  0x7b   : > { %p2873_p12 = scmp.ne.s32.totalorder %s3270_s15, %s2872_s25  ;;  %s2877_s20 = scalar_lea.hbm %s3710_s6, 32 }
  0x7c   : > { %p2878_p8 = scmp.lt.u32.totalorder %s3270_s15, %s3710_s6  ;;  %p2879_p2 = scmp.lt.u32.totalorder %s2877_s20, %s2872_s25 }
  0x7d   : > { %p2875_p13 = pnand %p2873_p12, %p3760_p10  ;;  %p2881_p7 = scmp.lt.u32.totalorder %s2872_s25, %s3270_s15 }
  0x7e   : > { %p2880_p6 = por %p2879_p2, %p2878_p8 }
  0x7f   : > { %p2876_p5 = pneg %p2875_p13 }
  0x80   : > { %p2882_p1 = por %p2881_p7, %p2880_p6 }
  0x82   : > { %p2883_p0 = pnand %p2882_p1, %p2876_p5 }
  0x84   : > { %2886 = shalt.err (!%p2883_p0)
}
  0x85   : > { %s2887_s19 = scalar_lea.vmem %s3273_s27, 16  ;;  %s3027_s29 = smov [#allocation8]  }
  0x86   : > { %p2888_p11 = scmp.ne.s32.totalorder %s3273_s27, %s2887_s19  ;;  %s2892_s11 = sshll.u32 %s3027_s29, 4  ;;  %s2893_s11 = int_to_ptr.vmem [resolvable:$false] %s2892_s11 }
  0x87   : > { %s2894_s8 = scalar_lea.vmem %s2893_s11, 32  ;;  %p2895_p9 = scmp.lt.s32.totalorder %s3273_s27, %s2893_s11 }
  0x88   : > { %p2890_p3 = pnand %p2888_p11, %p3760_p10  ;;  %p2896_p12 = scmp.lt.s32.totalorder %s2894_s8, %s2887_s19 }
  0x8a   : > { %p2891_p4 = pneg %p2890_p3  ;;  %p2897_p13 = por %p2896_p12, %p2895_p9 }
  0x8c   : > { %p2898_p8 = pnand %p2897_p13, %p2891_p4 }
  0x8e   : > { %2901 = shalt.err (!%p2898_p8)
}
  0x8f   : > { %p3761_p5 = scmp.ne.s32.totalorder %s3750_s21, 0  ;;  %s3317_s7 = scalar_lea.hbm %s3713_s9, %s3161_s24 }
  0x90   : > { %s560_s22 = scalar_lea.vmem [#allocation11], %s3158_s23  ;;  %s2902_s28 = scalar_lea.hbm %s3317_s7, 16 }
  0x91   : > { %2629 = dma.hbm_to_vmem [thread:$0]  (!%p3761_p5), %s3270_s15, 16, %s3273_s27, %s3181_s17  }
  0x92   : > { %s567_s25 = sshll.u32 %s560_s22, 4  ;;  %p2903_p2 = scmp.ne.s32.totalorder %s3317_s7, %s2902_s28  ;;  %s568_s25 = int_to_ptr.vmem [resolvable:$true] %s567_s25 }
  0x93   : > { %s2907_s17 = scalar_lea.hbm %s3713_s9, 32  ;;  %p2908_p1 = scmp.lt.u32.totalorder %s3317_s7, %s3713_s9 }
  0x94   : > { %p2905_p6 = pnand %p2903_p2, %p3760_p10  ;;  %p2909_p0 = scmp.lt.u32.totalorder %s2907_s17, %s2902_s28 }
  0x95   : > { %p2911_p3 = scmp.lt.u32.totalorder %s2902_s28, %s3317_s7 }
  0x96   : > { %p2906_p7 = pneg %p2905_p6  ;;  %p2910_p11 = por %p2909_p0, %p2908_p1 }
  0x98   : > { %p2912_p4 = por %p2911_p3, %p2910_p11 }
  0x9a   : > { %p2913_p9 = pnand %p2912_p4, %p2906_p7 }
  0x9c   : > { %2916 = shalt.err (!%p2913_p9)
}
  0x9d   : > { %s2917_s23 = scalar_lea.vmem %s568_s25, 16  ;;  %s3028_s24 = smov [#allocation11]  }
  0x9e   : > { %p2918_p12 = scmp.ne.s32.totalorder %s568_s25, %s2917_s23  ;;  %s2922_s19 = sshll.u32 %s3028_s24, 4  ;;  %s2923_s19 = int_to_ptr.vmem [resolvable:$false] %s2922_s19 }
  0x9f   : > { %s2924_s29 = scalar_lea.vmem %s2923_s19, 32  ;;  %p2925_p2 = scmp.lt.s32.totalorder %s568_s25, %s2923_s19 }
  0xa0   : > { %p2920_p13 = pnand %p2918_p12, %p3760_p10  ;;  %p2926_p6 = scmp.lt.s32.totalorder %s2924_s29, %s2917_s23 }
  0xa2   : > { %p2921_p8 = pneg %p2920_p13  ;;  %p2927_p5 = por %p2926_p6, %p2925_p2 }
  0xa4   : > { %p2928_p0 = pnand %p2927_p5, %p2921_p8 }
  0xa6   : > { %2931 = shalt.err (!%p2928_p0)
}
  0xa7   : > { %p3762_p1 = scmp.ne.s32.totalorder %s3750_s21, 0  ;;  %p3763_p7 = scmp.ne.s32.totalorder %s3757_s13, 0 }
  0xa8   : > { %p3764_p10 = scmp.eq.s32.totalorder (!%p3763_p7), %s3241_s5, 0 }
  0xa9   : > { %2635 = dma.hbm_to_vmem [thread:$0]  (!%p3762_p1), %s3317_s7, 16, %s568_s25, %s3220_s1  }
  0xaa   : > { %602 = sbr.rel (%p3763_p7) target bundleno = 2628 (0xa44), region = 76 }
  0xb1   : > { %2983 = dma.done.wait (%p3764_p10), [#allocation4], 256   ;;  %p3765_p11 = pmov %p3764_p10 }
  0xb2   : > { %s608_s26 = sand.u32 1, %s3241_s5   ;;  %s3346_s11 = sand.u32 1, %s3004_s30  }
  0xb3   : > { %2985 = vsyncadd (%p3765_p11), [#allocation4], 4294967040  ;;  %s609_s21 = scalar_lea.sflag [#allocation7], %s608_s26  ;;  %p3766_p5 = scmp.ne.s32.totalorder %s3756_s12, 0 }
  0xb5   : > { %2987 = dma.done.wait (%p3766_p5), %s609_s21, 32  }
  0xb6   : > { %2989 = vsyncadd (%p3766_p5), %s609_s21, 4294967264  ;;  %s625_s13 = scalar_lea.sflag [#allocation10], %s608_s26 }
  0xb7   : > { %2991 = dma.done.wait (%p3766_p5), %s625_s13, 32  }
  0xb8   : > { %2993 = vsyncadd (%p3766_p5), %s625_s13, 4294967264  ;;  %p728_p3 = scmp.lt.s32.totalorder %s3012_s16, 1  ;;  %s3767_s2 = sld [smem:[#allocation24_spill]] }
  0xb9   : > { %s3768_s4 = sld [smem:[#allocation25_spill]]  ;;  %s3769_s19 = sld [smem:[#allocation28_spill]] }
  0xba   : > { %s3361_s18 = scalar_select %p728_p3, %s3012_s16, 1 }
  0xbb   : > { %s3770_s10 = sld [smem:[#allocation29_spill]]  ;;  %s3771_s14 = sld [smem:[#allocation30_spill]] }
  0xbc   : > { %s2421_s7 = sshll.u32 %s3361_s18, 4  ;;  %s2424_s26 = sshll.u32 %s3361_s18, 5 }
  0xbd   : > { %s3772_s17 = sld [smem:[#allocation31_spill]]  ;;  %p2375_p4 = scmp.ne.s32.totalorder %s3012_s16, 0 }
  0xbe   : > { %s732_s20 = scalar_lea.vmem %s3767_s2, %s2421_s7  ;;  %v766_v0 = vld [vmem:[#allocation3] sm:$0xff] (!%p2375_p4)  ;;  %vm768_vm0 = vcmask (!%p2375_p4), 261120   ;;  %v767_v1 = vld [vmem:[#allocation3 + $0x8] sm:$0xff] (!%p2375_p4) }
  0xbf   : > { %s3374_s27 = scalar_lea.vmem %s3768_s4, %s2421_s7  ;;  %s3379_s29 = scalar_lea.vmem %s3769_s19, %s2421_s7  ;;  %769 = vst.msk [vmem:[#allocation2] sm:$0xff] (!%p2375_p4), %vm768_vm0, %v766_v0  ;;  %770 = vst.msk [vmem:[#allocation2 + $0x8] sm:$0xff] (!%p2375_p4), %vm768_vm0, %v767_v1 }
  0xc0   : > { %s3773_s4 = sld [smem:[#allocation32_spill]]  ;;  %s635_s7 = scalar_lea.vmem [#allocation11], %s3346_s11 }
  0xc1   : > { %s3385_s22 = scalar_lea.vmem %s3770_s10, %s2424_s26  ;;  %s753_s12 = scalar_lea.vmem %s3771_s14, %s3361_s18 }
  0xc2   : > { %765 = sbr.rel (%p2375_p4) target bundleno = 201 (0xc9), region = 100 }
  0xc3   : > { %s756_s15 = scalar_lea.vmem %s3772_s17, %s3361_s18 }
  0xc6   : > { %s759_s23 = scalar_lea.vmem %s3773_s4, %s3361_s18 }
  0xc9 PF: > { %v2734_v2 = vld [vmem:[%s732_s20] sm:$0xff]   ;;  %v3029_v3 = vmov 0.0   ;;  %v2735_v4 = vld [vmem:[%s732_s20 + $0x8] sm:$0xff]   ;;  %vm3030_vm1 = vmmov 0   ;;  %vm797_vm2 = vcmask 261120   ;;  %s3774_s4 = scalar_lea.vmem %s3707_s3, %s3361_s18  ;;  %s3031_s8 = smov 104  }
  0xca   : > { %2471 = vmatprep.subr.bf16.mxu0 %v3029_v3  ;;  %2479 = vmatprep.subr.bf16.mxu1 %v3029_v3  ;;  %v3405_v5 = vld [vmem:[#allocation2] sm:$0xff]  ;;  %v3407_v6 = vld [vmem:[#allocation2 + $0x8] sm:$0xff]  ;;  %s3032_s1 = smov 120   ;;  %s3033_s10 = smov 96   ;;  %vm887_vm3 = vcmask 64512   ;;  %vm1378_vm4 = vcmask 1043456  }
  0xcb   : > { %2472 = vmatpush3.bf16.msra.mxu0 %v2734_v2  ;;  %2475 = vmatprep.mubr.msk.bf16.mxu0 %vm3030_vm1, %v3029_v3  ;;  %v773_v7 = vpack.c.bf16 %v3407_v6, %v3405_v5  ;;  %v2376_v8 = vld [vmem:[%s3774_s4] ss:$0 sm:$0xff]  ;;  %s3034_s28 = smov 112   ;;  %s3035_s20 = smov 64   ;;  %vm1784_vm5 = vcmask 130048   ;;  %vm1787_vm6 = vcmask 195584  }
  0xcc   : > { %2473 = vmatprep.subr.bf16.mxu0 %v3029_v3  ;;  %2481 = vmatprep.mubr.msk.bf16.mxu1 %vm3030_vm1, %v3029_v3  ;;  %s3775_s26 = sld [smem:[#allocation23_spill]]  ;;  %s3036_s25 = smov 8   ;;  %vm2019_vm7 = vcmask 523264  }
  0xcd   : > { %s3037_s14 = smov 16   ;;  %s3038_s17 = smov 24  }
  0xce   : > { %s3778_s0 = scalar_lea.vmem [#allocation9], %s3346_s11  ;;  %p2416_p9 = scmp.ne.s32.totalorder %s3012_s16, 1 }
  0xcf   : > { %2474 = vmatpush3.bf16.msra.mxu0 %v2735_v4 }
  0xd0   : > { %2485 = vmatprep.subr.bf16.mxu0 %v3029_v3 }
  0xd2   : > { %2476 = vmatmul.mubr.msk.bf16.vlgmr.msra.gmra.mrb[0].mxu0 %vm797_vm2, %v773_v7  ;;  %v2380_v53 = vld [vmem:[%s3775_s26] ss:$0 sm:$0xff]  ;;  %v2381_v58 = vld [vmem:[%s3775_s26 + $0x1] ss:$0 sm:$0xff] }
  0xd3   : > { %2487 = vmatprep.mubr.msk.bf16.mxu0 %vm3030_vm1, %v3029_v3 }
 0x1a5   : > { %v835_v9 = vpop.f32.mrb[0].mxu0 }
 0x1a6   : > { %v2477_v10 = vpop.f32.mrb[1].mxu0  ;;  %v836_v12 = vadd.f32 %v2376_v8, %v835_v9 }
 0x1a7   : > { %v838_v11 = vpop.f32.mrb[2].mxu0 }
 0x1a8   : > { %v839_v13 = vadd.f32 %v2376_v8, %v838_v11  ;;  %v2478_v14 = vpop.f32.mrb[3].mxu0  ;;  %v862_v16 = vpack.c.bf16 %v836_v12, %v836_v12 }
 0x1aa   : > { %v2714_v15 = vpack.i.bf16 %v839_v13, %v836_v12  ;;  %v863_v17 = vpack.c.bf16 %v839_v13, %v839_v13 }
 0x1ac   : > { %2715 = vrot.lane.b32.xlu1 %v2714_v15, %s3031_s8  ;;  %2705 = vrot.lane.b32.xlu0 %v2714_v15, %s3032_s1 }
 0x1b0   : > { %885 = vrot.lane.b32.xlu1 %v862_v16, %s3033_s10  ;;  %2710 = vrot.lane.b32.xlu0 %v2714_v15, %s3034_s28 }
 0x1b4   : > { %935 = vrot.lane.b32.xlu0 %v863_v17, %s3033_s10 }
 0x21e   : > { %v2716_v18 = vpop.permute.xlu1 %2715  ;;  %v2706_v19 = vpop.permute.xlu0 %2705 }
 0x21f   : > { %v2708_v20 = vunpack.i.h.bf16 %v2706_v19  ;;  %v2707_v21 = vunpack.i.l.bf16 %v2706_v19  ;;  %v2717_v29 = vunpack.i.l.bf16 %v2716_v18  ;;  %v2718_v32 = vunpack.i.h.bf16 %v2716_v18 }
 0x221   : > { %v3425_v22 = vpack.c.bf16 %v2708_v20, %v2708_v20  ;;  %v3427_v23 = vpack.c.bf16 %v2707_v21, %v2707_v21  ;;  %v3444_v35 = vpack.c.bf16 %v2717_v29, %v2717_v29  ;;  %v3447_v36 = vpack.c.bf16 %v2718_v32, %v2718_v32 }
 0x222   : > { %v886_v24 = vpop.permute.xlu1 %885  ;;  %v2711_v25 = vpop.permute.xlu0 %2710 }
 0x223   : > { %v2713_v26 = vunpack.i.h.bf16 %v2711_v25  ;;  %v2712_v27 = vunpack.i.l.bf16 %v2711_v25  ;;  %984 = vrot.lane.b32.xlu1 %v3427_v23, %s3033_s10  ;;  %1033 = vrot.lane.b32.xlu0 %v3425_v22, %s3033_s10  ;;  %v892_v28 = vsel %vm887_vm3, %v886_v24, 0 }
 0x224   : > { %2480 = vmatpush3.bf16.xpose.msra.mxu1 %v892_v28 }
 0x225   : > { %v3434_v30 = vpack.c.bf16 %v2713_v26, %v2713_v26  ;;  %v3436_v31 = vpack.c.bf16 %v2712_v27, %v2712_v27  ;;  %2491 = vmatprep.subr.bf16.mxu1 %v3029_v3 }
 0x226   : > { %v936_v33 = vpop.permute.xlu0 %935 }
 0x227   : > { %v941_v34 = vsel %vm887_vm3, %v936_v33, 0  ;;  %1082 = vrot.lane.b32.xlu1 %v3436_v31, %s3033_s10  ;;  %1131 = vrot.lane.b32.xlu0 %v3434_v30, %s3033_s10 }
 0x228   : > { %2486 = vmatpush3.bf16.xpose.msra.mxu0 %v941_v34 }
 0x229   : > { %2497 = vmatprep.subr.bf16.mxu0 %v3029_v3 }
 0x22b   : > { %2482 = vmatmul.mubr.msk.bf16.vlgmr.msra.gmra.mrb[0].mxu1 %vm887_vm3, %v862_v16  ;;  %1180 = vrot.lane.b32.xlu1 %v3444_v35, %s3033_s10 }
 0x22c   : > { %1229 = vrot.lane.b32.xlu0 %v3447_v36, %s3033_s10  ;;  %2493 = vmatprep.mubr.msk.bf16.mxu1 %vm3030_vm1, %v3029_v3 }
 0x22f   : > { %1422 = vrot.lane.b32.xlu1 %v863_v17, %s3035_s20  ;;  %2488 = vmatmul.mubr.msk.bf16.vlgmr.msra.gmra.mrb[4].mxu0 %vm887_vm3, %v863_v17 }
 0x230   : > { %1373 = vrot.lane.b32.xlu0 %v862_v16, %s3035_s20  ;;  %2499 = vmatprep.mubr.msk.bf16.mxu0 %vm3030_vm1, %v3029_v3 }
 0x295   : > { %v985_v37 = vpop.permute.xlu1 %984  ;;  %v1034_v38 = vpop.permute.xlu0 %1033 }
 0x296   : > { %v990_v39 = vsel %vm887_vm3, %v985_v37, 0  ;;  %v1039_v40 = vsel %vm887_vm3, %v1034_v38, 0 }
 0x297   : > { %2492 = vmatpush3.bf16.xpose.msra.mxu1 %v990_v39  ;;  %2498 = vmatpush3.bf16.xpose.msra.mxu0 %v1039_v40 }
 0x298   : > { %2503 = vmatprep.subr.bf16.mxu1 %v3029_v3  ;;  %2509 = vmatprep.subr.bf16.mxu0 %v3029_v3 }
 0x299   : > { %v1083_v41 = vpop.permute.xlu1 %1082  ;;  %v1132_v42 = vpop.permute.xlu0 %1131 }
 0x29a   : > { %v1088_v43 = vsel %vm887_vm3, %v1083_v41, 0  ;;  %v1137_v44 = vsel %vm887_vm3, %v1132_v42, 0 }
 0x29d   : > { %v1181_v45 = vpop.permute.xlu1 %1180 }
 0x29e   : > { %2494 = vmatmul.mubr.msk.bf16.vlgmr.msra.gmra.mrb[4].mxu1 %vm887_vm3, %v3427_v23  ;;  %2500 = vmatmul.mubr.msk.bf16.vlgmr.msra.gmra.mrb[8].mxu0 %vm887_vm3, %v3425_v22  ;;  %v1230_v46 = vpop.permute.xlu0 %1229  ;;  %v1186_v47 = vsel %vm887_vm3, %v1181_v45, 0 }
 0x29f   : > { %2504 = vmatpush3.bf16.xpose.msra.mxu1 %v1088_v43  ;;  %2510 = vmatpush3.bf16.xpose.msra.mxu0 %v1137_v44  ;;  %v1235_v48 = vsel %vm887_vm3, %v1230_v46, 0 }
 0x2a0   : > { %2505 = vmatprep.mubr.msk.bf16.mxu1 %vm3030_vm1, %v3029_v3  ;;  %2511 = vmatprep.mubr.msk.bf16.mxu0 %vm3030_vm1, %v3029_v3 }
 0x2a1   : > { %2515 = vmatprep.subr.bf16.mxu1 %v3029_v3  ;;  %2521 = vmatprep.subr.bf16.mxu0 %v3029_v3  ;;  %v1423_v49 = vpop.permute.xlu1 %1422 }
 0x2a2   : > { %v1374_v50 = vpop.permute.xlu0 %1373  ;;  %v1428_v51 = vsel %vm1378_vm4, %v1423_v49, 0 }
 0x2a3   : > { %v1380_v52 = vsel %vm1378_vm4, %v1374_v50, 0 }
 0x2a6   : > { %2506 = vmatmul.mubr.msk.bf16.vlgmr.msra.gmra.mrb[8].mxu1 %vm887_vm3, %v3436_v31  ;;  %2512 = vmatmul.mubr.msk.bf16.vlgmr.msra.gmra.mrb[12].mxu0 %vm887_vm3, %v3434_v30 }
 0x2a7   : > { %2516 = vmatpush3.bf16.xpose.msra.mxu1 %v1186_v47  ;;  %2522 = vmatpush3.bf16.xpose.msra.mxu0 %v1235_v48 }
 0x2a8   : > { %2517 = vmatprep.mubr.msk.bf16.mxu1 %vm3030_vm1, %v3029_v3  ;;  %2523 = vmatprep.mubr.msk.bf16.mxu0 %vm3030_vm1, %v3029_v3 }
 0x2a9   : > { %2527 = vmatprep.subr.bf16.mxu1 %v3029_v3  ;;  %2533 = vmatprep.subr.bf16.mxu0 %v3029_v3 }
 0x2ae   : > { %2518 = vmatmul.mubr.msk.bf16.vlgmr.msra.gmra.mrb[12].mxu1 %vm887_vm3, %v3444_v35  ;;  %2524 = vmatmul.mubr.msk.bf16.vlgmr.msra.gmra.mrb[16].mxu0 %vm887_vm3, %v3447_v36 }
 0x2af   : > { %2528 = vmatpush3.bf16.msra.mxu1 %v1380_v52  ;;  %2534 = vmatpush3.bf16.msra.mxu0 %v1428_v51 }
 0x2b0   : > { %2529 = vmatprep.mubr.msk.bf16.mxu1 %vm3030_vm1, %v3029_v3  ;;  %2535 = vmatprep.mubr.msk.bf16.mxu0 %vm3030_vm1, %v3029_v3 }
 0x2b1   : > { %2539 = vmatprep.subr.bf16.mxu1 %v3029_v3  ;;  %2545 = vmatprep.subr.bf16.mxu0 %v3029_v3 }
 0x2fe   : > { %v928_v54 = vpop.f32.mrb[0].mxu1 }
 0x2ff   : > { %v929_v55 = vadd.f32 %v2380_v53, %v928_v54  ;;  %v2483_v56 = vpop.f32.mrb[1].mxu1 }
 0x300   : > { %v931_v57 = vpop.f32.mrb[2].mxu1 }
 0x301   : > { %v2484_v59 = vpop.f32.mrb[3].mxu1  ;;  %v1277_v60 = vsel %vm887_vm3, %v929_v55, -inf }
 0x302   : > { %1278 = vmax.xlane.f32.xlu1 %v1277_v60  ;;  %v977_v61 = vpop.f32.mrb[4].mxu0 }
 0x303   : > { %v978_v62 = vadd.f32 %v2381_v58, %v977_v61  ;;  %v2489_v63 = vpop.f32.mrb[5].mxu0 }
 0x304   : > { %v980_v0 = vpop.f32.mrb[6].mxu0 }
 0x305   : > { %v2490_v1 = vpop.f32.mrb[7].mxu0  ;;  %v1280_v2 = vsel %vm887_vm3, %v978_v62, -inf }
 0x306   : > { %1281 = vmax.xlane.f32.xlu0 %v1280_v2 }
 0x371   : > { %v1026_v4 = vpop.f32.mrb[4].mxu1  ;;  %v1075_v7 = vpop.f32.mrb[8].mxu0 }
 0x372   : > { %v1027_v8 = vadd.f32 %v2380_v53, %v1026_v4  ;;  %v1076_v9 = vadd.f32 %v2381_v58, %v1075_v7  ;;  %v2495_v10 = vpop.f32.mrb[5].mxu1  ;;  %v2501_v11 = vpop.f32.mrb[9].mxu0 }
 0x373   : > { %v1029_v12 = vpop.f32.mrb[6].mxu1  ;;  %v1078_v13 = vpop.f32.mrb[10].mxu0 }
 0x374   : > { %v2496_v14 = vpop.f32.mrb[7].mxu1  ;;  %v2502_v15 = vpop.f32.mrb[11].mxu0  ;;  %v1283_v16 = vsel %vm887_vm3, %v1027_v8, -inf  ;;  %v1286_v17 = vsel %vm887_vm3, %v1076_v9, -inf }
 0x375   : > { %1284 = vmax.xlane.f32.xlu0 %v1283_v16  ;;  %1287 = vmax.xlane.f32.xlu1 %v1286_v17 }
 0x379   : > { %v1124_v18 = vpop.f32.mrb[8].mxu1  ;;  %v1173_v19 = vpop.f32.mrb[12].mxu0 }
 0x37a   : > { %v3511_v20 = vadd.f32 %v2380_v53, %v1124_v18  ;;  %v1174_v21 = vadd.f32 %v2381_v58, %v1173_v19  ;;  %v2507_v24 = vpop.f32.mrb[9].mxu1  ;;  %v2513_v25 = vpop.f32.mrb[13].mxu0 }
 0x37b   : > { %v1127_v26 = vpop.f32.mrb[10].mxu1  ;;  %v1176_v27 = vpop.f32.mrb[14].mxu0 }
 0x37c   : > { %v2508_v28 = vpop.f32.mrb[11].mxu1  ;;  %v2514_v29 = vpop.f32.mrb[15].mxu0  ;;  %v1289_v32 = vsel %vm887_vm3, %v3511_v20, -inf  ;;  %v1292_v33 = vsel %vm887_vm3, %v1174_v21, -inf }
 0x37d   : > { %1290 = vmax.xlane.f32.xlu0 %v1289_v32  ;;  %1293 = vmax.xlane.f32.xlu1 %v1292_v33 }
 0x381   : > { %v1222_v34 = vpop.f32.mrb[12].mxu1  ;;  %v1271_v37 = vpop.f32.mrb[16].mxu0 }
 0x382   : > { %v3516_v38 = vadd.f32 %v2380_v53, %v1222_v34  ;;  %v1272_v39 = vadd.f32 %v2381_v58, %v1271_v37  ;;  %v2519_v40 = vpop.f32.mrb[13].mxu1  ;;  %v2525_v41 = vpop.f32.mrb[17].mxu0 }
 0x383   : > { %v1225_v42 = vpop.f32.mrb[14].mxu1  ;;  %v1274_v43 = vpop.f32.mrb[18].mxu0 }
 0x384   : > { %v2520_v44 = vpop.f32.mrb[15].mxu1  ;;  %v2526_v45 = vpop.f32.mrb[19].mxu0  ;;  %v1295_v46 = vsel %vm887_vm3, %v3516_v38, -inf  ;;  %v1298_v47 = vsel %vm887_vm3, %v1272_v39, -inf }
 0x385   : > { %1296 = vmax.xlane.f32.xlu0 %v1295_v46  ;;  %1299 = vmax.xlane.f32.xlu1 %v1298_v47 }
 0x38f   : > { %v1279_v48 = vpop.xlane.xlu1 %1278 }
 0x390   : > { %v1301_v50 = vsub.f32 %v929_v55, %v1279_v48 }
 0x392   : > { %v1309_v52 = vmul.f32 1.442695, %v1301_v50 }
 0x393   : > { %v1282_v49 = vpop.xlane.xlu0 %1281 }
 0x394   : > { %v1302_v51 = vsub.f32 %v978_v62, %v1282_v49  ;;  %2744 = vpow2.f32 %v1309_v52 }
 0x396   : > { %1470 = vrot.lane.b32.xlu1 %v3427_v23, %s3035_s20  ;;  %v1311_v53 = vmul.f32 1.442695, %v1302_v51 }
 0x398   : > { %2746 = vpow2.f32 %v1311_v53 }
 0x39b   : > { %1518 = vrot.lane.b32.xlu0 %v3425_v22, %s3035_s20 }
 0x39e   : > { %v2745_v54 = vpop.eup %2744 }
 0x39f   : > { %v1325_v57 = vsel %vm887_vm3, %v2745_v54, 0.0 }
 0x3a2   : > { %v2747_v56 = vpop.eup %2746 }
 0x3a3   : > { %v1328_v58 = vsel %vm887_vm3, %v2747_v56, 0.0 }
 0x3ba   : > { %1326 = vadd.xlane.f32.xlu0 %v1325_v57  ;;  %1329 = vadd.xlane.f32.xlu1 %v1328_v58 }
 0x3cb   : > { %1566 = vrot.lane.b32.xlu1 %v3436_v31, %s3035_s20 }
 0x402   : > { %v1285_v22 = vpop.xlane.xlu0 %1284  ;;  %v1288_v23 = vpop.xlane.xlu1 %1287 }
 0x403   : > { %v1303_v59 = vsub.f32 %v1027_v8, %v1285_v22  ;;  %v1304_v55 = vsub.f32 %v1076_v9, %v1288_v23 }
 0x405   : > { %v1313_v60 = vmul.f32 1.442695, %v1303_v59  ;;  %v1315_v61 = vmul.f32 1.442695, %v1304_v55 }
 0x407   : > { %2748 = vpow2.f32 %v1313_v60 }
 0x408   : > { %2750 = vpow2.f32 %v1315_v61 }
 0x40a   : > { %v1294_v62 = vpop.xlane.xlu1 %1293  ;;  %v1291_v14 = vpop.xlane.xlu0 %1290 }
 0x40b   : > { %v1306_v63 = vsub.f32 %v1174_v21, %v1294_v62  ;;  %v1305_v15 = vsub.f32 %v3511_v20, %v1291_v14 }
 0x40d   : > { %v1319_v0 = vmul.f32 1.442695, %v1306_v63  ;;  %v1317_v17 = vmul.f32 1.442695, %v1305_v15 }
 0x40f   : > { %2752 = vpow2.f32 %v1319_v0 }
 0x411   : > { %v3529_v1 = vpop.eup %2748 }
 0x412   : > { %v3531_v2 = vpop.eup %2750  ;;  %v1300_v4 = vpop.xlane.xlu1 %1299  ;;  %v1331_v31 = vsel %vm887_vm3, %v3529_v1, 0.0 }
 0x413   : > { %v1308_v7 = vsub.f32 %v1272_v39, %v1300_v4  ;;  %1332 = vadd.xlane.f32.xlu0 %v1331_v31  ;;  %v1334_v8 = vsel %vm887_vm3, %v3531_v2, 0.0  ;;  %v1297_v16 = vpop.xlane.xlu0 %1296 }
 0x414   : > { %1335 = vadd.xlane.f32.xlu1 %v1334_v8  ;;  %v1307_v18 = vsub.f32 %v3516_v38, %v1297_v16 }
 0x415   : > { %v1323_v9 = vmul.f32 1.442695, %v1308_v7 }
 0x416   : > { %v1321_v19 = vmul.f32 1.442695, %v1307_v18  ;;  %v1471_v24 = vpop.permute.xlu1 %1470 }
 0x417   : > { %2754 = vpow2.f32 %v1323_v9  ;;  %v1519_v21 = vpop.permute.xlu0 %1518  ;;  %v1476_v38 = vsel %vm1378_vm4, %v1471_v24, 0 }
 0x418   : > { %2756 = vpow2.f32 %v1317_v17  ;;  %v1524_v39 = vsel %vm1378_vm4, %v1519_v21, 0 }
 0x419   : > { %v3537_v10 = vpop.eup %2752  ;;  %2758 = vpow2.f32 %v1321_v19 }
 0x41a   : > { %v1340_v11 = vsel %vm887_vm3, %v3537_v10, 0.0 }
 0x41b   : > { %1341 = vadd.xlane.f32.xlu1 %v1340_v11 }
 0x421   : > { %v3541_v12 = vpop.eup %2754 }
 0x422   : > { %v1346_v13 = vsel %vm887_vm3, %v3541_v12, 0.0  ;;  %v3551_v25 = vpop.eup %2756 }
 0x423   : > { %1347 = vadd.xlane.f32.xlu1 %v1346_v13  ;;  %v3555_v20 = vpop.eup %2758 }
 0x429   : > { %1614 = vrot.lane.b32.xlu0 %v3434_v30, %s3035_s20  ;;  %v1337_v30 = vsel %vm887_vm3, %v3551_v25, 0.0 }
 0x434   : > { %1662 = vrot.lane.b32.xlu1 %v3444_v35, %s3035_s20  ;;  %v1343_v35 = vsel %vm887_vm3, %v3555_v20, 0.0 }
 0x447   : > { %v1327_v26 = vpop.xlane.xlu0 %1326  ;;  %v1330_v27 = vpop.xlane.xlu1 %1329 }
 0x448   : > { %2760 = vrcp.f32 %v1327_v26  ;;  %1338 = vadd.xlane.f32.xlu0 %v1337_v30 }
 0x449   : > { %2762 = vrcp.f32 %v1330_v27 }
 0x44b   : > { %v1567_v40 = vpop.permute.xlu1 %1566 }
 0x44c   : > { %1344 = vadd.xlane.f32.xlu0 %v1343_v35  ;;  %v1572_v51 = vsel %vm1378_vm4, %v1567_v40, 0 }
 0x452   : > { %v2761_v28 = vpop.eup %2760 }
 0x453   : > { %v2763_v29 = vpop.eup %2762  ;;  %v1357_v32 = vmul.f32 %v2761_v28, %v2745_v54  ;;  %v2736_v28 = vld [vmem:[%s3374_s27] sm:$0xff]  }
 0x454   : > { %v1358_v33 = vmul.f32 %v2763_v29, %v2747_v56 }
 0x455   : > { %v1365_v34 = vpack.c.bf16 %v1357_v32, %v1357_v32 }
 0x456   : > { %v1366_v37 = vpack.c.bf16 %v1358_v33, %v1358_v33 }
 0x457   : > { %2530 = vmatmul.mubr.msk.bf16.vlgmr.msra.gmra.mrb[16].mxu1 %vm887_vm3, %v1365_v34 }
 0x458   : > { %2536 = vmatmul.mubr.msk.bf16.vlgmr.msra.gmra.mrb[20].mxu0 %vm887_vm3, %v1366_v37  ;;  %2540 = vmatpush3.bf16.msra.mxu1 %v1476_v38  ;;  %v2737_v38 = vld [vmem:[%s3374_s27 + $0x8] sm:$0xff]   ;;  %s3776_s27 = scalar_lea.vmem [#allocation6], %s3346_s11 }
 0x459   : > { %2546 = vmatpush3.bf16.msra.mxu0 %v1524_v39  ;;  %2541 = vmatprep.mubr.msk.bf16.mxu1 %vm3030_vm1, %v3029_v3 }
 0x45a   : > { %2547 = vmatprep.mubr.msk.bf16.mxu0 %vm3030_vm1, %v3029_v3  ;;  %2551 = vmatprep.subr.bf16.mxu1 %v3029_v3 }
 0x45b   : > { %2557 = vmatprep.subr.bf16.mxu0 %v3029_v3 }
 0x462   : > { %1710 = vrot.lane.b32.xlu0 %v3447_v36, %s3035_s20 }
 0x4a0   : > { %v1333_v41 = vpop.xlane.xlu0 %1332 }
 0x4a1   : > { %2764 = vrcp.f32 %v1333_v41  ;;  %v1336_v42 = vpop.xlane.xlu1 %1335 }
 0x4a2   : > { %2766 = vrcp.f32 %v1336_v42 }
 0x4a4   : > { %v1615_v48 = vpop.permute.xlu0 %1614 }
 0x4a5   : > { %v1620_v36 = vsel %vm1378_vm4, %v1615_v48, 0 }
 0x4a8   : > { %v1342_v43 = vpop.xlane.xlu1 %1341 }
 0x4a9   : > { %2768 = vrcp.f32 %v1342_v43 }
 0x4ab   : > { %v2765_v44 = vpop.eup %2764 }
 0x4ac   : > { %v2767_v45 = vpop.eup %2766  ;;  %v1359_v46 = vmul.f32 %v2765_v44, %v3529_v1 }
 0x4ad   : > { %v1360_v47 = vmul.f32 %v2767_v45, %v3531_v2 }
 0x4ae   : > { %v1367_v49 = vpack.c.bf16 %v1359_v46, %v1359_v46 }
 0x4af   : > { %v1368_v50 = vpack.c.bf16 %v1360_v47, %v1360_v47 }
 0x4b0   : > { %2542 = vmatmul.mubr.msk.bf16.vlgmr.msra.gmra.mrb[20].mxu1 %vm887_vm3, %v1367_v49  ;;  %v1348_v56 = vpop.xlane.xlu1 %1347 }
 0x4b1   : > { %2548 = vmatmul.mubr.msk.bf16.vlgmr.msra.gmra.mrb[24].mxu0 %vm887_vm3, %v1368_v50  ;;  %2552 = vmatpush3.bf16.msra.mxu1 %v1572_v51  ;;  %2770 = vrcp.f32 %v1348_v56 }
 0x4b2   : > { %2558 = vmatpush3.bf16.msra.mxu0 %v1620_v36  ;;  %2559 = vmatprep.mubr.msk.bf16.mxu0 %vm3030_vm1, %v3029_v3 }
 0x4b3   : > { %2569 = vmatprep.subr.bf16.mxu0 %v3029_v3  ;;  %2553 = vmatprep.mubr.msk.bf16.mxu1 %vm3030_vm1, %v3029_v3  ;;  %v2769_v52 = vpop.eup %2768 }
 0x4b4   : > { %2563 = vmatprep.subr.bf16.mxu1 %v3029_v3  ;;  %v1362_v53 = vmul.f32 %v2769_v52, %v3537_v10  ;;  %v1663_v63 = vpop.permute.xlu1 %1662 }
 0x4b5   : > { %v1668_v2 = vsel %vm1378_vm4, %v1663_v63, 0 }
 0x4b6   : > { %v1370_v54 = vpack.c.bf16 %v1362_v53, %v1362_v53 }
 0x4b9   : > { %2560 = vmatmul.mubr.msk.bf16.vlgmr.msra.gmra.mrb[28].mxu0 %vm887_vm3, %v1370_v54 }
 0x4ba   : > { %2571 = vmatprep.mubr.msk.bf16.mxu0 %vm3030_vm1, %v3029_v3 }
 0x4bb   : > { %v2771_v58 = vpop.eup %2770 }
 0x4bc   : > { %v1364_v23 = vmul.f32 %v2771_v58, %v3541_v12 }
 0x4be   : > { %v1372_v61 = vpack.c.bf16 %v1364_v23, %v1364_v23 }
 0x4d5   : > { %v1339_v57 = vpop.xlane.xlu0 %1338 }
 0x4d6   : > { %2772 = vrcp.f32 %v1339_v57 }
 0x4d9   : > { %v1345_v22 = vpop.xlane.xlu0 %1344 }
 0x4da   : > { %2774 = vrcp.f32 %v1345_v22 }
 0x4dd   : > { %v1711_v59 = vpop.permute.xlu0 %1710 }
 0x4de   : > { %v1716_v55 = vsel %vm1378_vm4, %v1711_v59, 0 }
 0x4df   : > { %2570 = vmatpush3.bf16.msra.mxu0 %v1716_v55 }
 0x4e0   : > { %v2773_v60 = vpop.eup %2772  ;;  %2583 = vmatprep.subr.bf16.mxu0 %v3029_v3 }
 0x4e1   : > { %v1361_v62 = vmul.f32 %v2773_v60, %v3551_v25 }
 0x4e2   : > { %2572 = vmatmul.mubr.msk.bf16.vlgmr.msra.gmra.mrb[32].mxu0 %vm887_vm3, %v1372_v61  ;;  %v2398_v61 = vld [vmem:[%s3776_s27] ss:$0 sm:$0xff] }
 0x4e3   : > { %v1369_v0 = vpack.c.bf16 %v1361_v62, %v1361_v62  ;;  %2587 = vmatprep.mubr.msk.bf16.mxu0 %vm3030_vm1, %v3029_v3 }
 0x4e4   : > { %v2775_v1 = vpop.eup %2774 }
 0x4e5   : > { %2554 = vmatmul.mubr.msk.bf16.vlgmr.msra.gmra.mrb[24].mxu1 %vm887_vm3, %v1369_v0  ;;  %v1363_v4 = vmul.f32 %v2775_v1, %v3555_v20 }
 0x4e6   : > { %2564 = vmatpush3.bf16.msra.mxu1 %v1668_v2  ;;  %2565 = vmatprep.mubr.msk.bf16.mxu1 %vm3030_vm1, %v3029_v3 }
 0x4e7   : > { %2575 = vmatprep.subr.bf16.mxu1 %v3029_v3  ;;  %v1371_v31 = vpack.c.bf16 %v1363_v4, %v1363_v4 }
 0x4ed   : > { %2566 = vmatmul.mubr.msk.bf16.vlgmr.msra.gmra.mrb[28].mxu1 %vm887_vm3, %v1371_v31 }
 0x4ee   : > { %2579 = vmatprep.mubr.msk.bf16.mxu1 %vm3030_vm1, %v3029_v3  ;;  %2576 = vmatpush3.bf16.msra.mxu1 %v2736_v28 }
 0x4ef   : > { %2577 = vmatprep.subr.bf16.mxu1 %v3029_v3 }
 0x4f2   : > { %2578 = vmatpush3.bf16.msra.mxu1 %v2737_v38 }
 0x4f3   : > { %2591 = vmatprep.subr.bf16.mxu1 %v3029_v3 }
 0x52a   : > { %v1416_v7 = vpop.f32.mrb[16].mxu1 }
 0x52b   : > { %v1464_v8 = vpop.f32.mrb[20].mxu0  ;;  %v2531_v9 = vpop.f32.mrb[17].mxu1 }
 0x52c   : > { %v2537_v10 = vpop.f32.mrb[21].mxu0  ;;  %v1419_v11 = vpop.f32.mrb[18].mxu1 }
 0x52d   : > { %v1467_v12 = vpop.f32.mrb[22].mxu0  ;;  %v2532_v13 = vpop.f32.mrb[19].mxu1 }
 0x52e   : > { %v2538_v14 = vpop.f32.mrb[23].mxu0  ;;  %v2738_v13 = vld [vmem:[%s3379_s29] sm:$0xff]  }
 0x52f   : > { %2584 = vmatpush3.bf16.msra.mxu0 %v2738_v13  ;;  %v2739_v14 = vld [vmem:[%s3379_s29 + $0x8] sm:$0xff]   ;;  %s3777_s29 = scalar_lea.vmem [#allocation8], %s3346_s11 }
 0x530   : > { %2585 = vmatprep.subr.bf16.mxu0 %v3029_v3 }
 0x533   : > { %2586 = vmatpush3.bf16.msra.mxu0 %v2739_v14 }
 0x583   : > { %v1512_v15 = vpop.f32.mrb[20].mxu1 }
 0x584   : > { %v1560_v16 = vpop.f32.mrb[24].mxu0  ;;  %v2543_v17 = vpop.f32.mrb[21].mxu1 }
 0x585   : > { %v2719_v18 = vpack.i.bf16 %v1560_v16, %v1512_v15  ;;  %v2549_v19 = vpop.f32.mrb[25].mxu0  ;;  %v1515_v21 = vpop.f32.mrb[22].mxu1  ;;  %v2741_v15 = vld [vmem:[%s3385_s22 + $0x8] sm:$0xff]  }
 0x586   : > { %v1563_v24 = vpop.f32.mrb[26].mxu0  ;;  %v2544_v25 = vpop.f32.mrb[23].mxu1 }
 0x587   : > { %2720 = vrot.lane.b32.xlu1 %v2719_v18, %s3036_s25  ;;  %v2550_v26 = vpop.f32.mrb[27].mxu0 }
 0x58c   : > { %v1656_v27 = vpop.f32.mrb[28].mxu0 }
 0x58d   : > { %v2561_v30 = vpop.f32.mrb[29].mxu0 }
 0x58e   : > { %v1659_v20 = vpop.f32.mrb[30].mxu0 }
 0x58f   : > { %v2562_v35 = vpop.f32.mrb[31].mxu0 }
 0x5b5   : > { %v1752_v29 = vpop.f32.mrb[32].mxu0 }
 0x5b6   : > { %v2573_v32 = vpop.f32.mrb[33].mxu0 }
 0x5b7   : > { %v1755_v33 = vpop.f32.mrb[34].mxu0 }
 0x5b8   : > { %v1608_v34 = vpop.f32.mrb[24].mxu1  ;;  %v2574_v37 = vpop.f32.mrb[35].mxu0 }
 0x5b9   : > { %v2724_v39 = vpack.i.bf16 %v1656_v27, %v1608_v34  ;;  %v2555_v40 = vpop.f32.mrb[25].mxu1  ;;  %v2402_v37 = vld [vmem:[%s3777_s29] ss:$0 sm:$0xff] }
 0x5ba   : > { %v1611_v41 = vpop.f32.mrb[26].mxu1 }
 0x5bb   : > { %v2556_v42 = vpop.f32.mrb[27].mxu1  ;;  %2725 = vrot.lane.b32.xlu0 %v2724_v39, %s3037_s14 }
 0x5bc   : > { %v2403_v42 = vld [vmem:[%s3778_s0] ss:$0 sm:$0xff] }
 0x5c0   : > { %v1704_v43 = vpop.f32.mrb[28].mxu1 }
 0x5c1   : > { %v2729_v44 = vpack.i.bf16 %v1752_v29, %v1704_v43  ;;  %v2567_v45 = vpop.f32.mrb[29].mxu1 }
 0x5c2   : > { %v1707_v46 = vpop.f32.mrb[30].mxu1 }
 0x5c3   : > { %v2568_v47 = vpop.f32.mrb[31].mxu1  ;;  %2730 = vrot.lane.b32.xlu1 %v2729_v44, %s3038_s17 }
 0x5c4   : > { %v2742_v47 = vld [vmem:[%s3385_s22 + $0x10] sm:$0xff]  }
 0x5f9   : > { %v2721_v48 = vpop.permute.xlu1 %2720 }
 0x5fa   : > { %v2723_v50 = vunpack.i.h.bf16 %v2721_v48  ;;  %v2722_v51 = vunpack.i.l.bf16 %v2721_v48  ;;  %v2743_v48 = vld [vmem:[%s3385_s22 + $0x18] sm:$0xff]  }
 0x5fc   : > { %v1783_v54 = vsel %vm887_vm3, %v1464_v8, %v2723_v50  ;;  %v1782_v56 = vsel %vm887_vm3, %v1416_v7, %v2722_v51 }
 0x62d   : > { %v2726_v49 = vpop.permute.xlu0 %2725 }
 0x62e   : > { %v2728_v36 = vunpack.i.h.bf16 %v2726_v49  ;;  %v2727_v52 = vunpack.i.l.bf16 %v2726_v49  ;;  %v2404_v49 = vld [vmem:[%s635_s7] ss:$0 sm:$0xff] }
 0x630   : > { %v1786_v22 = vsel %vm1784_vm5, %v1783_v54, %v2728_v36  ;;  %v1785_v23 = vsel %vm1784_vm5, %v1782_v56, %v2727_v52 }
 0x635   : > { %v2731_v53 = vpop.permute.xlu1 %2730 }
 0x636   : > { %v2733_v57 = vunpack.i.h.bf16 %v2731_v53  ;;  %v2732_v58 = vunpack.i.l.bf16 %v2731_v53 }
 0x638   : > { %v1789_v59 = vsel %vm1787_vm6, %v1786_v22, %v2733_v57  ;;  %v1788_v55 = vsel %vm1787_vm6, %v1785_v23, %v2732_v58 }
 0x639   : > { %v1790_v60 = vpack.c.bf16 %v1789_v59, %v1788_v55 }
 0x63b   : > { %2580 = vmatmul.mubr.msk.bf16.vlgmr.msra.gmra.mrb[32].mxu1 %vm797_vm2, %v1790_v60 }
 0x63c   : > { %2599 = vmatprep.mubr.msk.bf16.mxu1 %vm3030_vm1, %v3029_v3 }
 0x70e   : > { %v1851_v62 = vpop.f32.mrb[32].mxu1 }
 0x70f   : > { %v1852_v63 = vadd.f32 %v2398_v61, %v1851_v62  ;;  %v2581_v0 = vpop.f32.mrb[33].mxu1 }
 0x710   : > { %v1854_v1 = vpop.f32.mrb[34].mxu1 }
 0x711   : > { %v1858_v2 = vadd.f32 %v1852_v63, %v3405_v5  ;;  %v1855_v4 = vadd.f32 %v2398_v61, %v1854_v1  ;;  %v2582_v31 = vpop.f32.mrb[35].mxu1 }
 0x713   : > { %v1859_v7 = vadd.f32 %v1855_v4, %v3407_v6  ;;  %v1862_v8 = vsel %vm797_vm2, %v1858_v2, 0.0  ;;  %v1871_v9 = vmul.f32 %v1858_v2, %v1858_v2  ;;  %v2740_v6 = vld [vmem:[%s3385_s22] sm:$0xff]  }
 0x714   : > { %1863 = vadd.xlane.f32.xlu0 %v1862_v8  ;;  %2592 = vmatpush3.bf16.msra.mxu1 %v2740_v6 }
 0x715   : > { %v1865_v10 = vsel %vm797_vm2, %v1859_v7, 0.0  ;;  %v1873_v11 = vsel %vm797_vm2, %v1871_v9, 0.0  ;;  %v1872_v12 = vmul.f32 %v1859_v7, %v1859_v7  ;;  %2593 = vmatprep.subr.bf16.mxu1 %v3029_v3 }
 0x716   : > { %1866 = vadd.xlane.f32.xlu1 %v1865_v10 }
 0x717   : > { %v1876_v5 = vsel %vm797_vm2, %v1872_v12, 0.0 }
 0x718   : > { %1874 = vadd.xlane.f32.xlu0 %v1873_v11  ;;  %2594 = vmatpush3.bf16.msra.mxu1 %v2741_v15 }
 0x719   : > { %2595 = vmatprep.subr.bf16.mxu1 %v3029_v3 }
 0x71c   : > { %1877 = vadd.xlane.f32.xlu0 %v1876_v5  ;;  %2596 = vmatpush3.bf16.msra.mxu1 %v2742_v47 }
 0x71d   : > { %2597 = vmatprep.subr.bf16.mxu1 %v3029_v3  ;;  %v2408_v3 = vld [vmem:[%s753_s12] ss:$0 sm:$0xff] }
 0x720   : > { %2598 = vmatpush3.bf16.msra.mxu1 %v2743_v48 }
 0x7a1   : > { %v1864_v16 = vpop.xlane.xlu0 %1863 }
 0x7a2   : > { %v1869_v17 = vmul.f32 0.03125, %v1864_v16 }
 0x7a3   : > { %v1867_v18 = vpop.xlane.xlu1 %1866 }
 0x7a4   : > { %v1881_v21 = vmul.f32 %v1869_v17, %v1869_v17  ;;  %v1870_v24 = vmul.f32 0.03125, %v1867_v18  ;;  %v1889_v32 = vsub.f32 %v1858_v2, %v1869_v17 }
 0x7a5   : > { %v1875_v19 = vpop.xlane.xlu0 %1874 }
 0x7a6   : > { %v1879_v25 = vmul.f32 0.03125, %v1875_v19  ;;  %v1882_v30 = vmul.f32 %v1870_v24, %v1870_v24  ;;  %v1890_v38 = vsub.f32 %v1859_v7, %v1870_v24 }
 0x7a8   : > { %v1883_v26 = vsub.f32 %v1879_v25, %v1881_v21  ;;  %v2414_v25 = vld [vmem:[%s756_s15] ss:$0 sm:$0xff] }
 0x7a9   : > { %v1878_v27 = vpop.xlane.xlu0 %1877 }
 0x7aa   : > { %v1885_v20 = vadd.f32 1e-05, %v1883_v26  ;;  %v1880_v35 = vmul.f32 0.03125, %v1878_v27 }
 0x7ac   : > { %2776 = vrsqrt.f32 %v1885_v20  ;;  %v1884_v28 = vsub.f32 %v1880_v35, %v1882_v30  ;;  %v2415_v20 = vld [vmem:[%s759_s23] ss:$0 sm:$0xff] }
 0x7ae   : > { %v1886_v29 = vadd.f32 1e-05, %v1884_v28 }
 0x7b0   : > { %2778 = vrsqrt.f32 %v1886_v29 }
 0x7b6   : > { %v2777_v33 = vpop.eup %2776 }
 0x7b7   : > { %v1891_v34 = vmul.f32 %v2777_v33, %v1889_v32 }
 0x7b9   : > { %v1899_v41 = vmul.f32 %v2402_v37, %v1891_v34 }
 0x7ba   : > { %v2779_v39 = vpop.eup %2778 }
 0x7bb   : > { %v1892_v40 = vmul.f32 %v2779_v39, %v1890_v38  ;;  %v1907_v44 = vadd.f32 %v2403_v42, %v1899_v41 }
 0x7bd   : > { %v1900_v43 = vmul.f32 %v2402_v37, %v1892_v40 }
 0x7bf   : > { %v1908_v45 = vadd.f32 %v2403_v42, %v1900_v43 }
 0x7c1   : > { %v1909_v46 = vpack.c.bf16 %v1908_v45, %v1907_v44 }
 0x7c3   : > { %2588 = vmatmul.mubr.msk.bf16.vlgmr.msra.gmra.mrb[36].mxu0 %vm797_vm2, %v1909_v46 }
 0x896   : > { %v1970_v50 = vpop.f32.mrb[36].mxu0 }
 0x897   : > { %v1971_v51 = vadd.f32 %v2404_v49, %v1970_v50  ;;  %v2589_v36 = vpop.f32.mrb[37].mxu0 }
 0x898   : > { %v1973_v52 = vpop.f32.mrb[38].mxu0 }
 0x899   : > { %v1974_v53 = vadd.f32 %v2404_v49, %v1973_v52  ;;  %v2590_v54 = vpop.f32.mrb[39].mxu0  ;;  %v1977_v56 = vmax.f32 %v1971_v51, 0.0 }
 0x89b   : > { %v1978_v57 = vmax.f32 %v1974_v53, 0.0 }
 0x89d   : > { %v1979_v58 = vpack.c.bf16 %v1978_v57, %v1977_v56 }
 0x89f   : > { %2600 = vmatmul.mubr.msk.bf16.vlgmr.msra.gmra.mrb[36].mxu1 %vm2019_vm7, %v1979_v58 }
 0x972   : > { %v2057_v22 = vpop.f32.mrb[36].mxu1 }
 0x973   : > { %v2058_v23 = vadd.f32 %v2408_v3, %v2057_v22  ;;  %v2601_v59 = vpop.f32.mrb[37].mxu1 }
 0x974   : > { %v2060_v55 = vpop.f32.mrb[38].mxu1 }
 0x975   : > { %v2064_v60 = vadd.f32 %v2058_v23, %v1907_v44  ;;  %v2061_v61 = vadd.f32 %v2408_v3, %v2060_v55  ;;  %v2602_v62 = vpop.f32.mrb[39].mxu1 }
 0x977   : > { %v2065_v63 = vadd.f32 %v2061_v61, %v1908_v45  ;;  %v2068_v0 = vsel %vm797_vm2, %v2064_v60, 0.0  ;;  %v2076_v1 = vmul.f32 %v2064_v60, %v2064_v60 }
 0x978   : > { %2069 = vadd.xlane.f32.xlu1 %v2068_v0 }
 0x979   : > { %v2071_v2 = vsel %vm797_vm2, %v2065_v63, 0.0  ;;  %v2077_v4 = vmul.f32 %v2065_v63, %v2065_v63  ;;  %v2078_v31 = vsel %vm797_vm2, %v2076_v1, 0.0 }
 0x97a   : > { %2072 = vadd.xlane.f32.xlu0 %v2071_v2 }
 0x97b   : > { %v2081_v7 = vsel %vm797_vm2, %v2077_v4, 0.0 }
 0x97c   : > { %2079 = vadd.xlane.f32.xlu1 %v2078_v31 }
 0x97e   : > { %2082 = vadd.xlane.f32.xlu0 %v2081_v7 }
 0xa05   : > { %v2070_v8 = vpop.xlane.xlu1 %2069 }
 0xa06   : > { %v2074_v9 = vmul.f32 0.03125, %v2070_v8 }
 0xa07   : > { %v2073_v10 = vpop.xlane.xlu0 %2072 }
 0xa08   : > { %v2075_v11 = vmul.f32 0.03125, %v2073_v10  ;;  %v2086_v5 = vmul.f32 %v2074_v9, %v2074_v9  ;;  %v2094_v21 = vsub.f32 %v2064_v60, %v2074_v9 }
 0xa09   : > { %v2080_v12 = vpop.xlane.xlu1 %2079 }
 0xa0a   : > { %v2084_v13 = vmul.f32 0.03125, %v2080_v12  ;;  %v2087_v6 = vmul.f32 %v2075_v11, %v2075_v11  ;;  %v2095_v26 = vsub.f32 %v2065_v63, %v2075_v11 }
 0xa0b   : > { %v2083_v14 = vpop.xlane.xlu0 %2082 }
 0xa0c   : > { %v2088_v15 = vsub.f32 %v2084_v13, %v2086_v5  ;;  %v2085_v16 = vmul.f32 0.03125, %v2083_v14 }
 0xa0e   : > { %v2090_v17 = vadd.f32 1e-05, %v2088_v15  ;;  %v2089_v18 = vsub.f32 %v2085_v16, %v2087_v6 }
 0xa10   : > { %2780 = vrsqrt.f32 %v2090_v17  ;;  %v2091_v19 = vadd.f32 1e-05, %v2089_v18 }
 0xa12   : > { %2782 = vrsqrt.f32 %v2091_v19 }
 0xa1a   : > { %v2781_v24 = vpop.eup %2780 }
 0xa1b   : > { %v2096_v27 = vmul.f32 %v2781_v24, %v2094_v21 }
 0xa1c   : > { %v2783_v30 = vpop.eup %2782 }
 0xa1d   : > { %v2104_v35 = vmul.f32 %v2414_v25, %v2096_v27  ;;  %v2097_v28 = vmul.f32 %v2783_v30, %v2095_v26  ;;  %2119 = sbr.rel (%p2416_p9) target bundleno = 2596 (0xa24), region = 104 }
 0xa1f   : > { %v2112_v29 = vadd.f32 %v2415_v20, %v2104_v35  ;;  %v2105_v32 = vmul.f32 %v2414_v25, %v2097_v28 }
 0xa21   : > { %2114 = vst.msk [vmem:[#allocation2] sm:$0xff] %vm797_vm2, %v2112_v29  ;;  %v2113_v33 = vadd.f32 %v2415_v20, %v2105_v32  ;;  %2120 = vst.msk [vmem:[#allocation12] sm:$0xff] (!%p2416_p9), %vm797_vm2, %v2112_v29 }
 0xa23   : > { %2115 = vst.msk [vmem:[#allocation2 + $0x8] sm:$0xff] %vm797_vm2, %v2113_v33  ;;  %2121 = vst.msk [vmem:[#allocation12 + $0x8] sm:$0xff] (!%p2416_p9), %vm797_vm2, %v2113_v33 }
 0xa24 PF: > { %p2639_p12 = scmp.eq.s32.totalorder %s3241_s5, 1  ;;  %s3039_s18 = smov [#allocation12]  }
 0xa25   : > { %s2131_s15 = sshll.u32 %s3039_s18, 4  ;;  %s2132_s15 = int_to_ptr.vmem [resolvable:$true] %s2131_s15 }
 0xa26   : > { %s2932_s23 = scalar_lea.vmem %s2132_s15, 256  ;;  %p2939_p6 = scmp.lt.s32.totalorder %s2132_s15, %s2132_s15 }
 0xa27   : > { %p2933_p13 = scmp.ne.s32.totalorder %s2132_s15, %s2932_s23  ;;  %p2940_p0 = scmp.lt.s32.totalorder %s2932_s23, %s2932_s23 }
 0xa29   : > { %p2934_p8 = pnand %p2933_p13, %p2639_p12  ;;  %p2941_p1 = por %p2940_p0, %p2939_p6 }
 0xa2b   : > { %p2935_p2 = pneg %p2934_p8 }
 0xa2d   : > { %p2942_p7 = pnand %p2941_p1, %p2935_p2 }
 0xa2f   : > { %2945 = shalt.err (!%p2942_p7)
}
 0xa30   : > { %s3782_s20 = sld [smem:[#allocation33_spill]] }
 0xa36   : > { %s2946_s24 = scalar_lea.hbm %s3782_s20, 256 }
 0xa37   : > { %p2947_p10 = scmp.ne.s32.totalorder %s3782_s20, %s2946_s24  ;;  %p2952_p3 = scmp.lt.u32.totalorder %s2946_s24, %s3782_s20 }
 0xa39   : > { %p2948_p11 = pnand %p2947_p10, %p2639_p12 }
 0xa3b   : > { %p2949_p5 = pneg %p2948_p11 }
 0xa3d   : > { %p2954_p4 = pnand %p2952_p3, %p2949_p5 }
 0xa3f   : > { %2957 = shalt.err (!%p2954_p4)
}
 0xa40   : > { %s3040_s17 = smov 128  }
 0xa41   : > { %2616 = dma.vmem_to_hbm [thread:$0]  (%p2639_p12), %s2132_s15, 256, %s3782_s20, [#allocation5], %s3040_s17, %s3040_s17, %s3036_s25  }
 0xa42   : > { %2995 = dma.done.wait (%p2639_p12), [#allocation5], 256  }
 0xa43   : > { %2997 = vsyncadd (%p2639_p12), [#allocation5], 4294967040 }
 0xa44 PF: > { %s3783_s0 = sld [smem:[#allocation19_spill]]  ;;  %s3784_s2 = sld [smem:[#allocation17_spill]] }
 0xa45   : > { %s3785_s15 = sld [smem:[#allocation21_spill]]  ;;  %s3786_s16 = sld [smem:[#allocation18_spill]] }
 0xa46   : > { %s3787_s17 = sld [smem:[#allocation20_spill]]  ;;  %s3788_s29 = smov %s3004_s30 }
 0xa4a   : > { %s32_s18 = sadd.s32 1, %s3783_s0   ;;  %s3789_s30 = smov %s3784_s2 }
 0xa4b   : > { %p29_p9 = scmp.ge.s32.totalorder %s32_s18, 4  }
 0xa4d   :  { %31 = sbr.rel (!%p29_p9) target bundleno = 21 (0x15), region = 190 }
 0xa54   :  { %2147 = vsyncpa [#allocation4], 1 }
 0xa55   :  { %2149 = vsyncpa [#allocation4 + $0x1], 1 }
 0xa56   :  { %2150 = vsyncpa [#allocation7], 1 }
 0xa57   :  { %2152 = vsyncpa [#allocation7 + $0x1], 1 }
 0xa58   :  { %2153 = vsyncpa [#allocation10], 1 }
 0xa59   :  { %2155 = vsyncpa [#allocation10 + $0x1], 1 }
 0xa5a   :  { %2156 = vsyncpa [#allocation5], 1 }
 0xa5b   :  { %2158 = vsyncpa [#allocation5 + $0x1], 1 }

</bundles_post_ra>
